<compile_context>
chip_gen: v5e
topology: v5e:2x2
jax: 0.10.0
libtpu: 0.0.40
codegen_flags: <defaults>
</compile_context>

<pallas_src>
import numpy as np
import jax
import jax.numpy as jnp
from jax.experimental import pallas as pl
from jax.experimental.pallas import tpu as pltpu

# ---------------- synthetic "opt" config ----------------
B = 2            # batch size
FIXDIM = 8       # opt['fixdim']  (= #patches, also input dim of the fc heads)
D = 512          # self.size[1]
N_NODES = 3      # IDH, 1p19q, CDKN
ALPHA = 0.5      # opt['Network']['graph_alpha']
EPS = 1e-6       # LayerNorm eps

ADJ = np.array([[1.0, 0.4038, 0.3035],
                [1.0, 1.0,    0.1263],
                [0.2595, 0.0436, 1.0]], dtype=np.float32)


# ---------------- Pallas kernel ----------------
def label_graph_kernel(x_ref, gcw_ref, gcb_ref, gam_ref, bet_ref,
                       fcw_ref, fcb_ref,
                       logits_ref, hmean_ref):
    # x_ref    : [N*B*F, D]  f32   flattened stacked node features
    # gcw_ref  : [D, D]      bf16  GraphConvolution weight (stored bf16)
    # gcb_ref  : [1, D]      f32   GraphConvolution bias
    # gam_ref  : [3, D]      f32   per-node LayerNorm gamma
    # bet_ref  : [3, D]      f32   per-node LayerNorm beta
    # fcw_ref  : [3, 2, F]   f32   per-node linear-head weight (torch [out,in])
    # fcb_ref  : [3, 2]      f32   per-node linear-head bias
    # logits_ref : [3, B, 2]
    # hmean_ref  : [3, B, D]

    x_flat = x_ref[...]                                            # [48, D] f32

    # --- GCN support: one MXU matmul, bf16 operands, f32 accumulate ---
    support_flat = jnp.dot(x_flat.astype(jnp.bfloat16), gcw_ref[...],
                           preferred_element_type=jnp.float32)     # [48, D]
    support = support_flat.reshape(N_NODES, B, FIXDIM, D)          # [3,B,F,D]
    s0, s1, s2 = support[0], support[1], support[2]

    # --- adjacency mix across the 3 label nodes (constants baked in, VPU) ---
    mixed = jnp.stack(
        [float(ADJ[0, 0]) * s0 + float(ADJ[0, 1]) * s1 + float(ADJ[0, 2]) * s2,
         float(ADJ[1, 0]) * s0 + float(ADJ[1, 1]) * s1 + float(ADJ[1, 2]) * s2,
         float(ADJ[2, 0]) * s0 + float(ADJ[2, 1]) * s1 + float(ADJ[2, 2]) * s2],
        axis=0) + gcb_ref[...].reshape(1, 1, 1, D)                 # [3,B,F,D]

    gcn_out = jnp.maximum(mixed, 0.0)                              # ReLU
    x4 = x_flat.reshape(N_NODES, B, FIXDIM, D)
    resid = gcn_out * ALPHA + x4 * (1.0 - ALPHA)                   # residual mix

    # --- per-node LayerNorm over feature dim (biased variance, eps=1e-6) ---
    mu = jnp.mean(resid, axis=-1, keepdims=True)
    var = jnp.mean(jnp.square(resid - mu), axis=-1, keepdims=True)
    normed = (resid - mu) * jax.lax.rsqrt(var + EPS)
    normed = (normed * gam_ref[...][:, None, None, :]
              + bet_ref[...][:, None, None, :])                    # [3,B,F,D]

    # --- feature mean + tiny linear heads on the VPU (no MXU padding) ---
    feat = jnp.mean(normed, axis=-1)                               # [3,B,F]
    logits = jnp.sum(feat[:, :, None, :] * fcw_ref[...][:, None, :, :],
                     axis=-1)                                      # [3,B,2]
    logits_ref[...] = logits + fcb_ref[...][:, None, :]

    # --- mean over patches (lane-dense [.,.,512] output) ---
    hmean_ref[...] = jnp.mean(normed, axis=2)                      # [3,B,D]


# ---------------- jitted forward wrapper ----------------
@jax.jit
def label_correlation_graph_forward(enc_IDH, enc_1p19q, enc_CDKN, params):
    x = jnp.stack([enc_IDH, enc_1p19q, enc_CDKN], axis=0)          # [3,B,F,D]
    x_flat = x.reshape(N_NODES * B * FIXDIM, D).astype(jnp.float32)

    vmem = pl.BlockSpec(memory_space=pltpu.MemorySpace.VMEM)
    out_shape = (
        jax.ShapeDtypeStruct((N_NODES, B, 2), jnp.float32),
        jax.ShapeDtypeStruct((N_NODES, B, D), jnp.float32),
    )
    logits, hmeans = pl.pallas_call(
        label_graph_kernel,
        out_shape=out_shape,
        in_specs=[vmem] * 7,
        out_specs=(vmem, vmem),
    )(x_flat, params['gc_w_bf16'], params['gc_b'], params['ln_gamma'],
      params['ln_beta'], params['fc_w'], params['fc_b'])

    results_dict = {
        'logits_IDH': logits[0],
        'logits_1p19q': logits[1],
        'logits_CDKN': logits[2],
    }
    weight_IDH_wt = params['fc_w'][0, 0]
    weight_IDH_mut = params['fc_w'][0, 1]
    weight_1p19q_codel = params['fc_w'][1, 1]
    weight_CDKN_HOMDEL = params['fc_w'][2, 1]
    return (results_dict, weight_IDH_wt, weight_IDH_mut,
            weight_1p19q_codel, weight_CDKN_HOMDEL,
            hmeans[0], hmeans[1], hmeans[2])


# ---------------- pure-JAX reference (for validation) ----------------
def reference_forward(enc_IDH, enc_1p19q, enc_CDKN, params):
    x = jnp.stack([enc_IDH, enc_1p19q, enc_CDKN], axis=0)          # [3,B,F,D]
    adj = jnp.asarray(ADJ)
    gc_w = params['gc_w_bf16'].astype(jnp.float32)
    supports = jnp.einsum('nbfd,de->nbfe', x, gc_w,
                          precision=jax.lax.Precision.HIGHEST)
    mixed = jnp.einsum('nm,mbfe->nbfe', adj, supports) + params['gc_b'][0]
    resid = jax.nn.relu(mixed) * ALPHA + x * (1.0 - ALPHA)
    mu = resid.mean(-1, keepdims=True)
    var = ((resid - mu) ** 2).mean(-1, keepdims=True)
    normed = ((resid - mu) / jnp.sqrt(var + EPS)
              * params['ln_gamma'][:, None, None, :]
              + params['ln_beta'][:, None, None, :])
    feat = normed.mean(-1)                                         # [3,B,F]
    logits = (jnp.einsum('nbf,ncf->nbc', feat, params['fc_w'],
                         precision=jax.lax.Precision.HIGHEST)
              + params['fc_b'][:, None, :])
    hmeans = normed.mean(2)                                        # [3,B,D]
    return logits, hmeans


# ---------------- deterministic parameter init ----------------
def init_params(key):
    k = jax.random.split(key, 4)
    lim_gc = 1.0 / np.sqrt(D)
    lim_fc = 1.0 / np.sqrt(FIXDIM)
    gc_w = jax.random.uniform(k[0], (D, D), jnp.float32, -lim_gc, lim_gc)
    return {
        # stored in bf16: halves the dominant weight DMA, no per-call cast
        'gc_w_bf16': gc_w.astype(jnp.bfloat16),
        'gc_b': jax.random.uniform(k[1], (1, D), jnp.float32, -lim_gc, lim_gc),
        'ln_gamma': jnp.ones((N_NODES, D), jnp.float32),
        'ln_beta': jnp.zeros((N_NODES, D), jnp.float32),
        'fc_w': jax.random.uniform(k[2], (N_NODES, 2, FIXDIM), jnp.float32,
                                   -lim_fc, lim_fc),
        'fc_b': jax.random.uniform(k[3], (N_NODES, 2), jnp.float32,
                                   -lim_fc, lim_fc),
    }


if __name__ == "__main__":
    key = jax.random.PRNGKey(0)
    kx, kp = jax.random.split(key)
    k1, k2, k3 = jax.random.split(kx, 3)
    enc_IDH = jax.random.normal(k1, (B, FIXDIM, D), jnp.float32)
    enc_1p19q = jax.random.normal(k2, (B, FIXDIM, D), jnp.float32)
    enc_CDKN = jax.random.normal(k3, (B, FIXDIM, D), jnp.float32)
    params = init_params(kp)

    out = label_correlation_graph_forward(enc_IDH, enc_1p19q, enc_CDKN, params)
    jax.block_until_ready(out)

    # validate against pure-JAX f32 reference (bf16 activation cast in the
    # kernel's MXU path -> loose tolerance)
    ref_logits, ref_hmeans = reference_forward(enc_IDH, enc_1p19q, enc_CDKN,
                                               params)
    results_dict = out[0]
    got_logits = jnp.stack([results_dict['logits_IDH'],
                            results_dict['logits_1p19q'],
                            results_dict['logits_CDKN']], axis=0)
    got_hmeans = jnp.stack(out[5:8], axis=0)
    np.testing.assert_allclose(np.asarray(got_logits), np.asarray(ref_logits),
                               rtol=2e-2, atol=2e-2)
    np.testing.assert_allclose(np.asarray(got_hmeans), np.asarray(ref_hmeans),
                               rtol=2e-2, atol=2e-2)

    print("KERNEL_OK")
</pallas_src>

<mosaic_0001>
module attributes {stable_mosaic.version = 11 : i64} {
  func.func @label_graph_kernel(%arg0: memref<48x512xf32, #tpu.memory_space<vmem>>, %arg1: memref<512x512xbf16, #tpu.memory_space<vmem>>, %arg2: memref<1x512xf32, #tpu.memory_space<vmem>>, %arg3: memref<3x512xf32, #tpu.memory_space<vmem>>, %arg4: memref<3x512xf32, #tpu.memory_space<vmem>>, %arg5: memref<3x2x8xf32, #tpu.memory_space<vmem>>, %arg6: memref<3x2xf32, #tpu.memory_space<vmem>>, %arg7: memref<3x2x2xf32, #tpu.memory_space<vmem>>, %arg8: memref<3x2x512xf32, #tpu.memory_space<vmem>>) attributes {dimension_semantics = [], scalar_prefetch = 0 : i64, scratch_operands = 0 : i64, tpu.core_type = #tpu.core_type<tc>} {
    %c0 = arith.constant 0 : index
    %c0_0 = arith.constant 0 : index
    %0 = vector.load %arg0[%c0, %c0_0] : memref<48x512xf32, #tpu.memory_space<vmem>>, vector<48x512xf32>
    %1 = arith.truncf %0 : vector<48x512xf32> to vector<48x512xbf16>
    %c0_1 = arith.constant 0 : index
    %c0_2 = arith.constant 0 : index
    %2 = vector.load %arg1[%c0_1, %c0_2] : memref<512x512xbf16, #tpu.memory_space<vmem>>, vector<512x512xbf16>
    %cst = arith.constant dense<0.000000e+00> : vector<48x512xf32>
    %3 = tpu.matmul %1, %2, %cst {dimension_numbers = #tpu.dot_dimension_numbers<[1], [0], [0], [1], [0, 0, 1, 1], [], []>} : vector<48x512xbf16>, vector<512x512xbf16>, vector<48x512xf32> -> vector<48x512xf32>
    %4 = vector.shape_cast %3 : vector<48x512xf32> to vector<3x2x8x512xf32>
    %5 = vector.extract_strided_slice %4 {offsets = [0, 0, 0, 0], sizes = [1, 2, 8, 512], strides = [1, 1, 1, 1]} : vector<3x2x8x512xf32> to vector<1x2x8x512xf32>
    %6 = vector.shape_cast %5 : vector<1x2x8x512xf32> to vector<2x8x512xf32>
    %7 = vector.extract_strided_slice %4 {offsets = [1, 0, 0, 0], sizes = [1, 2, 8, 512], strides = [1, 1, 1, 1]} : vector<3x2x8x512xf32> to vector<1x2x8x512xf32>
    %8 = vector.shape_cast %7 : vector<1x2x8x512xf32> to vector<2x8x512xf32>
    %9 = vector.extract_strided_slice %4 {offsets = [2, 0, 0, 0], sizes = [1, 2, 8, 512], strides = [1, 1, 1, 1]} : vector<3x2x8x512xf32> to vector<1x2x8x512xf32>
    %10 = vector.shape_cast %9 : vector<1x2x8x512xf32> to vector<2x8x512xf32>
    %cst_3 = arith.constant 1.000000e+00 : f32
    %11 = vector.broadcast %cst_3 : f32 to vector<2x8x512xf32>
    %12 = arith.mulf %11, %6 : vector<2x8x512xf32>
    %cst_4 = arith.constant 4.038000e-01 : f32
    %13 = vector.broadcast %cst_4 : f32 to vector<2x8x512xf32>
    %14 = arith.mulf %13, %8 : vector<2x8x512xf32>
    %15 = arith.addf %12, %14 : vector<2x8x512xf32>
    %cst_5 = arith.constant 3.035000e-01 : f32
    %16 = vector.broadcast %cst_5 : f32 to vector<2x8x512xf32>
    %17 = arith.mulf %16, %10 : vector<2x8x512xf32>
    %18 = arith.addf %15, %17 : vector<2x8x512xf32>
    %cst_6 = arith.constant 1.000000e+00 : f32
    %19 = vector.broadcast %cst_6 : f32 to vector<2x8x512xf32>
    %20 = arith.mulf %19, %6 : vector<2x8x512xf32>
    %cst_7 = arith.constant 1.000000e+00 : f32
    %21 = vector.broadcast %cst_7 : f32 to vector<2x8x512xf32>
    %22 = arith.mulf %21, %8 : vector<2x8x512xf32>
    %23 = arith.addf %20, %22 : vector<2x8x512xf32>
    %cst_8 = arith.constant 1.263000e-01 : f32
    %24 = vector.broadcast %cst_8 : f32 to vector<2x8x512xf32>
    %25 = arith.mulf %24, %10 : vector<2x8x512xf32>
    %26 = arith.addf %23, %25 : vector<2x8x512xf32>
    %cst_9 = arith.constant 2.595000e-01 : f32
    %27 = vector.broadcast %cst_9 : f32 to vector<2x8x512xf32>
    %28 = arith.mulf %27, %6 : vector<2x8x512xf32>
    %cst_10 = arith.constant 4.360000e-02 : f32
    %29 = vector.broadcast %cst_10 : f32 to vector<2x8x512xf32>
    %30 = arith.mulf %29, %8 : vector<2x8x512xf32>
    %31 = arith.addf %28, %30 : vector<2x8x512xf32>
    %cst_11 = arith.constant 1.000000e+00 : f32
    %32 = vector.broadcast %cst_11 : f32 to vector<2x8x512xf32>
    %33 = arith.mulf %32, %10 : vector<2x8x512xf32>
    %34 = arith.addf %31, %33 : vector<2x8x512xf32>
    %35 = vector.shape_cast %18 : vector<2x8x512xf32> to vector<1x2x8x512xf32>
    %36 = vector.shape_cast %26 : vector<2x8x512xf32> to vector<1x2x8x512xf32>
    %37 = vector.shape_cast %34 : vector<2x8x512xf32> to vector<1x2x8x512xf32>
    %38 = tpu.concatenate %35, %36, %37 in 0 : vector<1x2x8x512xf32>, vector<1x2x8x512xf32>, vector<1x2x8x512xf32> -> vector<3x2x8x512xf32>
    %c0_12 = arith.constant 0 : index
    %c0_13 = arith.constant 0 : index
    %39 = vector.load %arg2[%c0_12, %c0_13] : memref<1x512xf32, #tpu.memory_space<vmem>>, vector<1x512xf32>
    %40 = vector.shape_cast %39 : vector<1x512xf32> to vector<1x1x1x512xf32>
    %41 = vector.broadcast %40 : vector<1x1x1x512xf32> to vector<3x2x8x512xf32>
    %42 = arith.addf %38, %41 : vector<3x2x8x512xf32>
    %cst_14 = arith.constant 0.000000e+00 : f32
    %43 = vector.broadcast %cst_14 : f32 to vector<3x2x8x512xf32>
    %44 = arith.maximumf %42, %43 : vector<3x2x8x512xf32>
    %45 = vector.shape_cast %0 : vector<48x512xf32> to vector<3x2x8x512xf32>
    %cst_15 = arith.constant 5.000000e-01 : f32
    %46 = vector.broadcast %cst_15 : f32 to vector<3x2x8x512xf32>
    %47 = arith.mulf %44, %46 : vector<3x2x8x512xf32>
    %cst_16 = arith.constant 5.000000e-01 : f32
    %48 = vector.broadcast %cst_16 : f32 to vector<3x2x8x512xf32>
    %49 = arith.mulf %45, %48 : vector<3x2x8x512xf32>
    %50 = arith.addf %47, %49 : vector<3x2x8x512xf32>
    %cst_17 = arith.constant dense<0.000000e+00> : vector<3x2x8xf32>
    %51 = vector.multi_reduction <add>, %50, %cst_17 [3] : vector<3x2x8x512xf32> to vector<3x2x8xf32>
    %52 = vector.shape_cast %51 : vector<3x2x8xf32> to vector<3x2x8x1xf32>
    %cst_18 = arith.constant 5.120000e+02 : f32
    %53 = vector.broadcast %cst_18 : f32 to vector<3x2x8x1xf32>
    %54 = arith.divf %52, %53 : vector<3x2x8x1xf32>
    %55 = vector.broadcast %54 : vector<3x2x8x1xf32> to vector<3x2x8x512xf32>
    %56 = arith.subf %50, %55 : vector<3x2x8x512xf32>
    %57 = arith.mulf %56, %56 : vector<3x2x8x512xf32>
    %cst_19 = arith.constant dense<0.000000e+00> : vector<3x2x8xf32>
    %58 = vector.multi_reduction <add>, %57, %cst_19 [3] : vector<3x2x8x512xf32> to vector<3x2x8xf32>
    %59 = vector.shape_cast %58 : vector<3x2x8xf32> to vector<3x2x8x1xf32>
    %cst_20 = arith.constant 5.120000e+02 : f32
    %60 = vector.broadcast %cst_20 : f32 to vector<3x2x8x1xf32>
    %61 = arith.divf %59, %60 : vector<3x2x8x1xf32>
    %62 = vector.broadcast %54 : vector<3x2x8x1xf32> to vector<3x2x8x512xf32>
    %63 = arith.subf %50, %62 : vector<3x2x8x512xf32>
    %cst_21 = arith.constant 9.99999997E-7 : f32
    %64 = vector.broadcast %cst_21 : f32 to vector<3x2x8x1xf32>
    %65 = arith.addf %61, %64 : vector<3x2x8x1xf32>
    %66 = math.rsqrt %65 : vector<3x2x8x1xf32>
    %67 = vector.broadcast %66 : vector<3x2x8x1xf32> to vector<3x2x8x512xf32>
    %68 = arith.mulf %63, %67 : vector<3x2x8x512xf32>
    %c0_22 = arith.constant 0 : index
    %c0_23 = arith.constant 0 : index
    %69 = vector.load %arg3[%c0_22, %c0_23] : memref<3x512xf32, #tpu.memory_space<vmem>>, vector<3x512xf32>
    %70 = vector.shape_cast %69 : vector<3x512xf32> to vector<3x1x1x512xf32>
    %71 = vector.broadcast %70 : vector<3x1x1x512xf32> to vector<3x2x8x512xf32>
    %72 = arith.mulf %68, %71 : vector<3x2x8x512xf32>
    %c0_24 = arith.constant 0 : index
    %c0_25 = arith.constant 0 : index
    %73 = vector.load %arg4[%c0_24, %c0_25] : memref<3x512xf32, #tpu.memory_space<vmem>>, vector<3x512xf32>
    %74 = vector.shape_cast %73 : vector<3x512xf32> to vector<3x1x1x512xf32>
    %75 = vector.broadcast %74 : vector<3x1x1x512xf32> to vector<3x2x8x512xf32>
    %76 = arith.addf %72, %75 : vector<3x2x8x512xf32>
    %cst_26 = arith.constant dense<0.000000e+00> : vector<3x2x8xf32>
    %77 = vector.multi_reduction <add>, %76, %cst_26 [3] : vector<3x2x8x512xf32> to vector<3x2x8xf32>
    %cst_27 = arith.constant 5.120000e+02 : f32
    %78 = vector.broadcast %cst_27 : f32 to vector<3x2x8xf32>
    %79 = arith.divf %77, %78 : vector<3x2x8xf32>
    %80 = vector.shape_cast %79 : vector<3x2x8xf32> to vector<3x2x1x8xf32>
    %c0_28 = arith.constant 0 : index
    %c0_29 = arith.constant 0 : index
    %c0_30 = arith.constant 0 : index
    %81 = vector.load %arg5[%c0_28, %c0_29, %c0_30] : memref<3x2x8xf32, #tpu.memory_space<vmem>>, vector<3x2x8xf32>
    %82 = vector.shape_cast %81 : vector<3x2x8xf32> to vector<3x1x2x8xf32>
    %83 = vector.broadcast %80 : vector<3x2x1x8xf32> to vector<3x2x2x8xf32>
    %84 = vector.broadcast %82 : vector<3x1x2x8xf32> to vector<3x2x2x8xf32>
    %85 = arith.mulf %83, %84 : vector<3x2x2x8xf32>
    %cst_31 = arith.constant dense<0.000000e+00> : vector<3x2x2xf32>
    %86 = vector.multi_reduction <add>, %85, %cst_31 [3] : vector<3x2x2x8xf32> to vector<3x2x2xf32>
    %c0_32 = arith.constant 0 : index
    %c0_33 = arith.constant 0 : index
    %87 = vector.load %arg6[%c0_32, %c0_33] : memref<3x2xf32, #tpu.memory_space<vmem>>, vector<3x2xf32>
    %88 = vector.shape_cast %87 : vector<3x2xf32> to vector<3x1x2xf32>
    %89 = vector.broadcast %88 : vector<3x1x2xf32> to vector<3x2x2xf32>
    %90 = arith.addf %86, %89 : vector<3x2x2xf32>
    %c0_34 = arith.constant 0 : index
    %c0_35 = arith.constant 0 : index
    %c0_36 = arith.constant 0 : index
    %91 = vector.load %arg7[%c0_34, %c0_35, %c0_36] : memref<3x2x2xf32, #tpu.memory_space<vmem>>, vector<3x2x2xf32>
    tpu.vector_store %arg7[%c0_34, %c0_35, %c0_36], %90 {strides = array<i32>} : memref<3x2x2xf32, #tpu.memory_space<vmem>>, vector<3x2x2xf32>,
    %cst_37 = arith.constant dense<0.000000e+00> : vector<3x2x512xf32>
    %92 = vector.multi_reduction <add>, %76, %cst_37 [2] : vector<3x2x8x512xf32> to vector<3x2x512xf32>
    %cst_38 = arith.constant 8.000000e+00 : f32
    %93 = vector.broadcast %cst_38 : f32 to vector<3x2x512xf32>
    %94 = arith.divf %92, %93 : vector<3x2x512xf32>
    %c0_39 = arith.constant 0 : index
    %c0_40 = arith.constant 0 : index
    %c0_41 = arith.constant 0 : index
    %95 = vector.load %arg8[%c0_39, %c0_40, %c0_41] : memref<3x2x512xf32, #tpu.memory_space<vmem>>, vector<3x2x512xf32>
    tpu.vector_store %arg8[%c0_39, %c0_40, %c0_41], %94 {strides = array<i32>} : memref<3x2x512xf32, #tpu.memory_space<vmem>>, vector<3x2x512xf32>,
    return
  }
}

</mosaic_0001>

<bundles_post_ra>
// kernel: label_correlation_graph_forward.1
= control target key start
LH: loop header
LB: loop body
LE: loop exit
PB: predicated region body
PF: predicated region fallthrough
CT: control target
= control target key end

     0   :  { %14 = vsyncpa [#allocation3], 0  ;;  %s3074_s30 = smov [#allocation2]   ;;  %s3075_s10 = smov 256   ;;  %s4245_s0 = inlined_call_operand.vmem [shape: f32[48,512], index: 0, kind: input, shape index: {}]   ;;  %s4246_s1 = inlined_call_operand.hbm [shape: bf16[512,512], index: 1, kind: input, shape index: {}]   ;;  %s4247_s2 = inlined_call_operand.vmem [shape: f32[1,512], index: 2, kind: input, shape index: {}]   ;;  %s4248_s3 = inlined_call_operand.vmem [shape: f32[3,512], index: 3, kind: input, shape index: {}]   ;;  %s4249_s4 = inlined_call_operand.vmem [shape: f32[3,512], index: 4, kind: input, shape index: {}]   ;;  %s4250_s5 = inlined_call_operand.vmem [shape: f32[3,2,8], index: 5, kind: input, shape index: {}]   ;;  %s4251_s6 = inlined_call_operand.vmem [shape: f32[3,2], index: 6, kind: input, shape index: {}]   ;;  %s4252_s7 = inlined_call_operand.vmem [shape: f32[3,2,2], index: 7, kind: output, shape index: {0}]   ;;  %s4253_s8 = inlined_call_operand.vmem [shape: f32[3,2,512], index: 8, kind: output, shape index: {1}]  }
   0x1   :  { %s21_s29 = sshll.u32 %s4246_s1, 4  ;;  %s23_s9 = sshll.u32 %s3074_s30, 4  ;;  %s22_s29 = int_to_ptr.hbm [resolvable:$true] %s21_s29  ;;  %s24_s9 = int_to_ptr.vmem [resolvable:$true] %s23_s9 }
   0x2   :  { %s3076_s11 = smov 16  }
   0x3   :  { %29 = dma.hbm_to_vmem [thread:$0]  %s22_s29, 16384, %s24_s9, [#allocation3], %s3075_s10, %s3075_s10, %s3076_s11  }
   0x4   :  { %3072 = dma.done.wait [#allocation3], 16384  }
   0x5   :  { %3073 = vsyncadd [#allocation3], 4294950912  ;;  %v2466_v0 = vld [vmem:[#allocation2 + $0xe0] sm:$0xf]  ;;  %v2894_v1 = vld [vmem:[#allocation2 + $0xec] sm:$0xf0] }
   0x6   :  { %v2594_v2 = vld [vmem:[#allocation2 + $0x1e0] sm:$0xf]  ;;  %v2467_v3 = vor.u32 %v2894_v1, %v2466_v0  ;;  %v2926_v4 = vld [vmem:[#allocation2 + $0x1ec] sm:$0xf0]  ;;  %vm1676_vm1 = vcmask 1042434   ;;  %vm1688_vm2 = vcmask 1044484  }
   0x7   :  { %v2722_v5 = vld [vmem:[#allocation2 + $0x2e0] sm:$0xf]  ;;  %v2958_v6 = vld [vmem:[#allocation2 + $0x2ec] sm:$0xf0]  ;;  %v2595_v7 = vor.u32 %v2926_v4, %v2594_v2  ;;  %vm1690_vm3 = vcmask 1043458   ;;  %vm1680_vm4 = vcmask 1041409  }
   0x8   :  { %v2723_v8 = vor.u32 %v2958_v6, %v2722_v5  ;;  %v2850_v9 = vld [vmem:[#allocation2 + $0x3e0] sm:$0xf]  ;;  %v2990_v10 = vld [vmem:[#allocation2 + $0x3ec] sm:$0xf0]  ;;  %848 = vmatpush.bf16.msra.mxu0 %v2467_v3  ;;  %vm1682_vm5 = vcmask 1043459   ;;  %vm1684_vm6 = vcmask 1042433  }
   0x9   :  { %v2450_v11 = vld [vmem:[#allocation2 + $0xc0] sm:$0xf]  ;;  %v2851_v12 = vor.u32 %v2990_v10, %v2850_v9  ;;  %v2890_v13 = vld [vmem:[#allocation2 + $0xcc] sm:$0xf0]  ;;  %872 = vmatpush.bf16.msra.mxu1 %v2595_v7 }
   0xa   :  { %v2578_v14 = vld [vmem:[#allocation2 + $0x1c0] sm:$0xf]  ;;  %v2922_v15 = vld [vmem:[#allocation2 + $0x1cc] sm:$0xf0]  ;;  %896 = vmatpush.bf16.msra.mxu2 %v2723_v8  ;;  %v2451_v16 = vor.u32 %v2890_v13, %v2450_v11 }
   0xb   :  { %v2579_v17 = vor.u32 %v2922_v15, %v2578_v14  ;;  %v2706_v18 = vld [vmem:[#allocation2 + $0x2c0] sm:$0xf]  ;;  %v2954_v19 = vld [vmem:[#allocation2 + $0x2cc] sm:$0xf0]  ;;  %920 = vmatpush.bf16.msra.mxu3 %v2851_v12 }
   0xc   :  { %v2834_v20 = vld [vmem:[#allocation2 + $0x3c0] sm:$0xf]  ;;  %v2707_v21 = vor.u32 %v2954_v19, %v2706_v18  ;;  %v2986_v22 = vld [vmem:[#allocation2 + $0x3cc] sm:$0xf0]  ;;  %849 = vmatpush.bf16.msra.mxu0 %v2451_v16 }
   0xd   :  { %v2434_v23 = vld [vmem:[#allocation2 + $0xa0] sm:$0xf]  ;;  %v2886_v24 = vld [vmem:[#allocation2 + $0xac] sm:$0xf0]  ;;  %v2835_v25 = vor.u32 %v2986_v22, %v2834_v20  ;;  %873 = vmatpush.bf16.msra.mxu1 %v2579_v17 }
   0xe   :  { %v2562_v26 = vld [vmem:[#allocation2 + $0x1a0] sm:$0xf]  ;;  %v2918_v27 = vld [vmem:[#allocation2 + $0x1ac] sm:$0xf0]  ;;  %v2435_v29 = vor.u32 %v2886_v24, %v2434_v23  ;;  %897 = vmatpush.bf16.msra.mxu2 %v2707_v21 }
   0xf   :  { %v2690_v28 = vld [vmem:[#allocation2 + $0x2a0] sm:$0xf]  ;;  %v2950_v30 = vld [vmem:[#allocation2 + $0x2ac] sm:$0xf0]  ;;  %v2563_v33 = vor.u32 %v2918_v27, %v2562_v26  ;;  %921 = vmatpush.bf16.msra.mxu3 %v2835_v25 }
  0x10   :  { %v2818_v31 = vld [vmem:[#allocation2 + $0x3a0] sm:$0xf]  ;;  %v2982_v32 = vld [vmem:[#allocation2 + $0x3ac] sm:$0xf0]  ;;  %v2691_v34 = vor.u32 %v2950_v30, %v2690_v28  ;;  %850 = vmatpush.bf16.msra.mxu0 %v2435_v29  ;;  %v45_v30 = vld [vmem:[%s4245_s0 + $0x8] sm:$0xff] }
  0x11   :  { %v2418_v35 = vld [vmem:[#allocation2 + $0x80] sm:$0xf]  ;;  %v2882_v36 = vld [vmem:[#allocation2 + $0x8c] sm:$0xf0]  ;;  %v2819_v38 = vor.u32 %v2982_v32, %v2818_v31  ;;  %874 = vmatpush.bf16.msra.mxu1 %v2563_v33  ;;  %v49_v31 = vld [vmem:[%s4245_s0 + $0x28] sm:$0xff] }
  0x12   :  { %v2546_v37 = vld [vmem:[#allocation2 + $0x180] sm:$0xf]  ;;  %v2914_v39 = vld [vmem:[#allocation2 + $0x18c] sm:$0xf0]  ;;  %v2419_v44 = vor.u32 %v2882_v36, %v2418_v35  ;;  %898 = vmatpush.bf16.msra.mxu2 %v2691_v34  ;;  %v2956_v32 = vld [vmem:[#allocation2 + $0x2e4] sm:$0xf] }
  0x13   :  { %v2674_v40 = vld [vmem:[#allocation2 + $0x280] sm:$0xf]  ;;  %v2946_v41 = vld [vmem:[#allocation2 + $0x28c] sm:$0xf0]  ;;  %v2547_v45 = vor.u32 %v2914_v39, %v2546_v37  ;;  %922 = vmatpush.bf16.msra.mxu3 %v2819_v38  ;;  %v2724_v33 = vld [vmem:[#allocation2 + $0x2f0] sm:$0xf0] }
  0x14   :  { %v2802_v42 = vld [vmem:[#allocation2 + $0x380] sm:$0xf]  ;;  %v2978_v43 = vld [vmem:[#allocation2 + $0x38c] sm:$0xf0]  ;;  %v2675_v46 = vor.u32 %v2946_v41, %v2674_v40  ;;  %851 = vmatpush.bf16.msra.mxu0 %v2419_v44  ;;  %v2988_v36 = vld [vmem:[#allocation2 + $0x3e4] sm:$0xf]  ;;  %v2727_v44 = vor.u32 %v2956_v32, %v2724_v33 }
  0x15   :  { %v2402_v47 = vld [vmem:[#allocation2 + $0x60] sm:$0xf]  ;;  %v2878_v48 = vld [vmem:[#allocation2 + $0x6c] sm:$0xf0]  ;;  %v2803_v50 = vor.u32 %v2978_v43, %v2802_v42  ;;  %875 = vmatpush.bf16.msra.mxu1 %v2547_v45  ;;  %v2852_v37 = vld [vmem:[#allocation2 + $0x3f0] sm:$0xf0] }
  0x16   :  { %v2530_v49 = vld [vmem:[#allocation2 + $0x160] sm:$0xf]  ;;  %v2910_v51 = vld [vmem:[#allocation2 + $0x16c] sm:$0xf0]  ;;  %v2403_v56 = vor.u32 %v2878_v48, %v2402_v47  ;;  %899 = vmatpush.bf16.msra.mxu2 %v2675_v46  ;;  %v47_v41 = vld [vmem:[%s4245_s0 + $0x18] sm:$0xff] }
  0x17   :  { %v2658_v52 = vld [vmem:[#allocation2 + $0x260] sm:$0xf]  ;;  %v2942_v53 = vld [vmem:[#allocation2 + $0x26c] sm:$0xf0]  ;;  %v2531_v57 = vor.u32 %v2910_v51, %v2530_v49  ;;  %923 = vmatpush.bf16.msra.mxu3 %v2803_v50  ;;  %v51_v42 = vld [vmem:[%s4245_s0 + $0x38] sm:$0xff]  ;;  %v2855_v49 = vor.u32 %v2988_v36, %v2852_v37 }
  0x18   :  { %v2786_v54 = vld [vmem:[#allocation2 + $0x360] sm:$0xf]  ;;  %v2974_v55 = vld [vmem:[#allocation2 + $0x36c] sm:$0xf0]  ;;  %v2659_v58 = vor.u32 %v2942_v53, %v2658_v52  ;;  %852 = vmatpush.bf16.msra.mxu0 %v2403_v56  ;;  %v2892_v45 = vld [vmem:[#allocation2 + $0xe4] sm:$0xf]  ;;  %v3154_v53 = vpack.c.bf16 %v49_v31, %v45_v30 }
  0x19   :  { %v2386_v59 = vld [vmem:[#allocation2 + $0x40] sm:$0xf]  ;;  %v2874_v60 = vld [vmem:[#allocation2 + $0x4c] sm:$0xf0]  ;;  %v2787_v62 = vor.u32 %v2974_v55, %v2786_v54  ;;  %876 = vmatpush.bf16.msra.mxu1 %v2531_v57  ;;  %v2468_v46 = vld [vmem:[#allocation2 + $0xf0] sm:$0xf0]  ;;  %v3158_v57 = vpack.c.bf16 %v51_v42, %v47_v41 }
  0x1a   :  { %v2514_v61 = vld [vmem:[#allocation2 + $0x140] sm:$0xf]  ;;  %v2906_v63 = vld [vmem:[#allocation2 + $0x14c] sm:$0xf0]  ;;  %v2387_v4 = vor.u32 %v2874_v60, %v2386_v59  ;;  %900 = vmatpush.bf16.msra.mxu2 %v2659_v58  ;;  %v2924_v47 = vld [vmem:[#allocation2 + $0x1e4] sm:$0xf]  ;;  %v2471_v58 = vor.u32 %v2892_v45, %v2468_v46 }
  0x1b   :  { %v2642_v0 = vld [vmem:[#allocation2 + $0x240] sm:$0xf]  ;;  %v2938_v1 = vld [vmem:[#allocation2 + $0x24c] sm:$0xf0]  ;;  %v2515_v5 = vor.u32 %v2906_v63, %v2514_v61  ;;  %924 = vmatpush.bf16.msra.mxu3 %v2787_v62  ;;  %v2596_v50 = vld [vmem:[#allocation2 + $0x1f0] sm:$0xf0] }
  0x1c   :  { %v2770_v2 = vld [vmem:[#allocation2 + $0x340] sm:$0xf]  ;;  %v2970_v3 = vld [vmem:[#allocation2 + $0x34c] sm:$0xf0]  ;;  %v2643_v6 = vor.u32 %v2938_v1, %v2642_v0  ;;  %853 = vmatpush.bf16.msra.mxu0 %v2387_v4  ;;  %v2952_v51 = vld [vmem:[#allocation2 + $0x2c4] sm:$0xf]  ;;  %v2599_v59 = vor.u32 %v2924_v47, %v2596_v50 }
  0x1d   :  { %v2370_v7 = vld [vmem:[#allocation2 + $0x20] sm:$0xf]  ;;  %v2870_v8 = vld [vmem:[#allocation2 + $0x2c] sm:$0xf0]  ;;  %v2771_v10 = vor.u32 %v2970_v3, %v2770_v2  ;;  %877 = vmatpush.bf16.msra.mxu1 %v2515_v5  ;;  %v2708_v52 = vld [vmem:[#allocation2 + $0x2d0] sm:$0xf0] }
  0x1e   :  { %v2498_v9 = vld [vmem:[#allocation2 + $0x120] sm:$0xf]  ;;  %v2902_v11 = vld [vmem:[#allocation2 + $0x12c] sm:$0xf0]  ;;  %v2371_v17 = vor.u32 %v2870_v8, %v2370_v7  ;;  %901 = vmatpush.bf16.msra.mxu2 %v2643_v6  ;;  %v2984_v55 = vld [vmem:[#allocation2 + $0x3c4] sm:$0xf]  ;;  %v2711_v60 = vor.u32 %v2952_v51, %v2708_v52 }
  0x1f   :  { %v2626_v12 = vld [vmem:[#allocation2 + $0x220] sm:$0xf]  ;;  %v2934_v13 = vld [vmem:[#allocation2 + $0x22c] sm:$0xf0]  ;;  %v2499_v21 = vor.u32 %v2902_v11, %v2498_v9  ;;  %925 = vmatpush.bf16.msra.mxu3 %v2771_v10  ;;  %v2836_v56 = vld [vmem:[#allocation2 + $0x3d0] sm:$0xf0] }
  0x20   :  { %v2754_v14 = vld [vmem:[#allocation2 + $0x320] sm:$0xf]  ;;  %v2966_v15 = vld [vmem:[#allocation2 + $0x32c] sm:$0xf0]  ;;  %v2627_v22 = vor.u32 %v2934_v13, %v2626_v12  ;;  %854 = vmatpush.bf16.msra.mxu0 %v2371_v17  ;;  %v2888_v61 = vld [vmem:[#allocation2 + $0xc4] sm:$0xf]  ;;  %v2839_v0 = vor.u32 %v2984_v55, %v2836_v56 }
  0x21   :  { %v2354_v16 = vld [vmem:[#allocation2] sm:$0xf]  ;;  %v2866_v18 = vld [vmem:[#allocation2 + $0xc] sm:$0xf0]  ;;  %v2755_v26 = vor.u32 %v2966_v15, %v2754_v14  ;;  %878 = vmatpush.bf16.msra.mxu1 %v2499_v21  ;;  %v2452_v62 = vld [vmem:[#allocation2 + $0xd0] sm:$0xf0] }
  0x22   :  { %v2482_v19 = vld [vmem:[#allocation2 + $0x100] sm:$0xf]  ;;  %v2898_v20 = vld [vmem:[#allocation2 + $0x10c] sm:$0xf0]  ;;  %v2355_v34 = vor.u32 %v2866_v18, %v2354_v16  ;;  %902 = vmatpush.bf16.msra.mxu2 %v2627_v22  ;;  %v2920_v63 = vld [vmem:[#allocation2 + $0x1c4] sm:$0xf]  ;;  %v2455_v6 = vor.u32 %v2888_v61, %v2452_v62 }
  0x23   :  { %v2610_v23 = vld [vmem:[#allocation2 + $0x200] sm:$0xf]  ;;  %v2930_v24 = vld [vmem:[#allocation2 + $0x20c] sm:$0xf0]  ;;  %v2483_v38 = vor.u32 %v2898_v20, %v2482_v19  ;;  %926 = vmatpush.bf16.msra.mxu3 %v2755_v26  ;;  %v2580_v1 = vld [vmem:[#allocation2 + $0x1d0] sm:$0xf0] }
  0x24   :  { %v2738_v25 = vld [vmem:[#allocation2 + $0x300] sm:$0xf]  ;;  %v2962_v27 = vld [vmem:[#allocation2 + $0x30c] sm:$0xf0]  ;;  %v2611_v39 = vor.u32 %v2930_v24, %v2610_v23  ;;  %855 = vmatpush.bf16.msra.mxu0 %v2355_v34  ;;  %v2948_v2 = vld [vmem:[#allocation2 + $0x2a4] sm:$0xf]  ;;  %v2583_v7 = vor.u32 %v2920_v63, %v2580_v1 }
  0x25   :  { %v44_v28 = vld [vmem:[%s4245_s0] sm:$0xff]  ;;  %v46_v35 = vld [vmem:[%s4245_s0 + $0x10] sm:$0xff]  ;;  %v2739_v43 = vor.u32 %v2962_v27, %v2738_v25  ;;  %879 = vmatpush.bf16.msra.mxu1 %v2483_v38  ;;  %v53_v26 = vld [vmem:[%s4245_s0 + $0x48] sm:$0xff] }
  0x26   :  { %v48_v29 = vld [vmem:[%s4245_s0 + $0x20] sm:$0xff]  ;;  %v50_v40 = vld [vmem:[%s4245_s0 + $0x30] sm:$0xff]  ;;  %903 = vmatpush.bf16.msra.mxu2 %v2611_v39  ;;  %v57_v27 = vld [vmem:[%s4245_s0 + $0x68] sm:$0xff] }
  0x27   :  { %v3152_v48 = vpack.c.bf16 %v48_v29, %v44_v28  ;;  %v3156_v54 = vpack.c.bf16 %v50_v40, %v46_v35  ;;  %927 = vmatpush.bf16.msra.mxu3 %v2739_v43  ;;  %v2692_v3 = vld [vmem:[#allocation2 + $0x2b0] sm:$0xf0]  ;;  %v2980_v4 = vld [vmem:[#allocation2 + $0x3a4] sm:$0xf]  ;;  %v55_v36 = vld [vmem:[%s4245_s0 + $0x58] sm:$0xff]  ;;  %v3190_v50 = vpack.c.bf16 %v57_v27, %v53_v26 }
  0x28   :  { %880 = vmatmul.bf16.vlgmr.msra.gmra.mxu1 %v3154_v53  ;;  %v2820_v5 = vld [vmem:[#allocation2 + $0x3b0] sm:$0xf0]  ;;  %944 = vmatpush.bf16.msrb.mxu0 %v2471_v58  ;;  %v2695_v8 = vor.u32 %v2948_v2, %v2692_v3  ;;  %v2884_v9 = vld [vmem:[#allocation2 + $0xa4] sm:$0xf]  ;;  %v59_v37 = vld [vmem:[%s4245_s0 + $0x78] sm:$0xff] }
  0x29   :  { %856 = vmatmul.bf16.vlgmr.msra.gmra.mxu0 %v3152_v48  ;;  %904 = vmatmul.bf16.vlgmr.msra.gmra.mxu2 %v3156_v54  ;;  %v2436_v10 = vld [vmem:[#allocation2 + $0xb0] sm:$0xf0]  ;;  %v2916_v11 = vld [vmem:[#allocation2 + $0x1a4] sm:$0xf]  ;;  %v2823_v12 = vor.u32 %v2980_v4, %v2820_v5  ;;  %v3194_v56 = vpack.c.bf16 %v59_v37, %v55_v36  ;;  %v2895_v36 = vld [vmem:[#allocation2 + $0xf4] sm:$0xf0] }
  0x2a   :  { %992 = vmatpush.bf16.msrb.mxu2 %v2727_v44  ;;  %928 = vmatmul.bf16.vlgmr.msra.gmra.mxu3 %v3158_v57  ;;  %v2564_v13 = vld [vmem:[#allocation2 + $0x1b0] sm:$0xf0]  ;;  %v2944_v14 = vld [vmem:[#allocation2 + $0x284] sm:$0xf]  ;;  %v2439_v18 = vor.u32 %v2884_v9, %v2436_v10 }
  0x2b   :  { %1016 = vmatpush.bf16.msrb.mxu3 %v2855_v49  ;;  %968 = vmatpush.bf16.msrb.mxu1 %v2599_v59  ;;  %v2676_v15 = vld [vmem:[#allocation2 + $0x290] sm:$0xf0]  ;;  %v2976_v16 = vld [vmem:[#allocation2 + $0x384] sm:$0xf]  ;;  %v2567_v21 = vor.u32 %v2916_v11, %v2564_v13 }
  0x2c   :  { %v2804_v17 = vld [vmem:[#allocation2 + $0x390] sm:$0xf0]  ;;  %945 = vmatpush.bf16.msrb.mxu0 %v2455_v6  ;;  %v52_v19 = vld [vmem:[%s4245_s0 + $0x40] sm:$0xff]  ;;  %v2679_v22 = vor.u32 %v2944_v14, %v2676_v15 }
  0x2d   :  { %v56_v20 = vld [vmem:[%s4245_s0 + $0x60] sm:$0xff]  ;;  %v2420_v24 = vld [vmem:[#allocation2 + $0x90] sm:$0xf0]  ;;  %v2807_v28 = vor.u32 %v2976_v16, %v2804_v17 }
  0x2e   :  { %993 = vmatpush.bf16.msrb.mxu2 %v2711_v60  ;;  %v2880_v23 = vld [vmem:[#allocation2 + $0x84] sm:$0xf]  ;;  %v2548_v29 = vld [vmem:[#allocation2 + $0x190] sm:$0xf0]  ;;  %v3188_v44 = vpack.c.bf16 %v56_v20, %v52_v19  ;;  %v2959_v19 = vld [vmem:[#allocation2 + $0x2f4] sm:$0xf0] }
  0x2f   :  { %1017 = vmatpush.bf16.msrb.mxu3 %v2839_v0  ;;  %969 = vmatpush.bf16.msrb.mxu1 %v2583_v7  ;;  %v2912_v25 = vld [vmem:[#allocation2 + $0x184] sm:$0xf]  ;;  %v2660_v31 = vld [vmem:[#allocation2 + $0x270] sm:$0xf0]  ;;  %v2423_v38 = vor.u32 %v2880_v23, %v2420_v24 }
  0x30   :  { %v2940_v30 = vld [vmem:[#allocation2 + $0x264] sm:$0xf]  ;;  %v54_v32 = vld [vmem:[%s4245_s0 + $0x50] sm:$0xff]  ;;  %946 = vmatpush.bf16.msrb.mxu0 %v2439_v18  ;;  %v2551_v39 = vor.u32 %v2912_v25, %v2548_v29  ;;  %v2730_v18 = vld [vmem:[#allocation2 + $0x2e8] sm:$0xf] }
  0x31   :  { %v2972_v33 = vld [vmem:[#allocation2 + $0x364] sm:$0xf]  ;;  %v2788_v34 = vld [vmem:[#allocation2 + $0x370] sm:$0xf0]  ;;  %v2663_v40 = vor.u32 %v2940_v30, %v2660_v31  ;;  %v61_v30 = vld [vmem:[%s4245_s0 + $0x88] sm:$0xff] }
  0x32   :  { %994 = vmatpush.bf16.msrb.mxu2 %v2695_v8  ;;  %v58_v35 = vld [vmem:[%s4245_s0 + $0x70] sm:$0xff]  ;;  %v2876_v41 = vld [vmem:[#allocation2 + $0x64] sm:$0xf]  ;;  %v2791_v45 = vor.u32 %v2972_v33, %v2788_v34  ;;  %v65_v31 = vld [vmem:[%s4245_s0 + $0xa8] sm:$0xff]  ;;  %v2731_v34 = vor.u32 %v2959_v19, %v2730_v18 }
  0x33   :  { %1018 = vmatpush.bf16.msrb.mxu3 %v2823_v12  ;;  %970 = vmatpush.bf16.msrb.mxu1 %v2567_v21  ;;  %v2404_v42 = vld [vmem:[#allocation2 + $0x70] sm:$0xf0]  ;;  %v2908_v43 = vld [vmem:[#allocation2 + $0x164] sm:$0xf]  ;;  %v3192_v51 = vpack.c.bf16 %v58_v35, %v54_v32  ;;  %v2858_v21 = vld [vmem:[#allocation2 + $0x3e8] sm:$0xf] }
  0x34   :  { %v2532_v46 = vld [vmem:[#allocation2 + $0x170] sm:$0xf0]  ;;  %v2936_v47 = vld [vmem:[#allocation2 + $0x244] sm:$0xf]  ;;  %947 = vmatpush.bf16.msrb.mxu0 %v2423_v38  ;;  %v2407_v58 = vor.u32 %v2876_v41, %v2404_v42  ;;  %v2474_v35 = vld [vmem:[#allocation2 + $0xe8] sm:$0xf] }
  0x35   :  { %v2644_v49 = vld [vmem:[#allocation2 + $0x250] sm:$0xf0]  ;;  %v2968_v52 = vld [vmem:[#allocation2 + $0x344] sm:$0xf]  ;;  %v2535_v59 = vor.u32 %v2908_v43, %v2532_v46  ;;  %v63_v42 = vld [vmem:[%s4245_s0 + $0x98] sm:$0xff] }
  0x36   :  { %995 = vmatpush.bf16.msrb.mxu2 %v2679_v22  ;;  %v2772_v55 = vld [vmem:[#allocation2 + $0x350] sm:$0xf0]  ;;  %v2647_v60 = vor.u32 %v2936_v47, %v2644_v49  ;;  %v2872_v61 = vld [vmem:[#allocation2 + $0x44] sm:$0xf]  ;;  %v2991_v22 = vld [vmem:[#allocation2 + $0x3f4] sm:$0xf0]  ;;  %v2475_v47 = vor.u32 %v2895_v36, %v2474_v35 }
  0x37   :  { %1019 = vmatpush.bf16.msrb.mxu3 %v2807_v28  ;;  %971 = vmatpush.bf16.msrb.mxu1 %v2551_v39  ;;  %v2388_v62 = vld [vmem:[#allocation2 + $0x50] sm:$0xf0]  ;;  %v2904_v63 = vld [vmem:[#allocation2 + $0x144] sm:$0xf]  ;;  %v2775_v0 = vor.u32 %v2968_v52, %v2772_v55  ;;  %v2859_v38 = vor.u32 %v2991_v22, %v2858_v21  ;;  %v2602_v39 = vld [vmem:[#allocation2 + $0x1e8] sm:$0xf] }
  0x38   :  { %v2516_v1 = vld [vmem:[#allocation2 + $0x150] sm:$0xf0]  ;;  %v2932_v2 = vld [vmem:[#allocation2 + $0x224] sm:$0xf]  ;;  %885 = vmatmul.bf16.gmra.mxu1 %v3190_v50  ;;  %948 = vmatpush.bf16.msrb.mxu0 %v2407_v58  ;;  %v2391_v6 = vor.u32 %v2872_v61, %v2388_v62  ;;  %v67_v43 = vld [vmem:[%s4245_s0 + $0xb8] sm:$0xff] }
  0x39   :  { %861 = vmatmul.bf16.gmra.mxu0 %v3188_v44  ;;  %v2628_v3 = vld [vmem:[#allocation2 + $0x230] sm:$0xf0]  ;;  %909 = vmatmul.bf16.gmra.mxu2 %v3192_v51  ;;  %v2964_v4 = vld [vmem:[#allocation2 + $0x324] sm:$0xf]  ;;  %v2519_v8 = vor.u32 %v2904_v63, %v2516_v1  ;;  %v2714_v49 = vld [vmem:[#allocation2 + $0x2c8] sm:$0xf]  ;;  %v3229_v63 = vpack.c.bf16 %v65_v31, %v61_v30 }
  0x3a   :  { %996 = vmatpush.bf16.msrb.mxu2 %v2663_v40  ;;  %v2756_v5 = vld [vmem:[#allocation2 + $0x330] sm:$0xf0]  ;;  %933 = vmatmul.bf16.gmra.mxu3 %v3194_v56  ;;  %v2868_v7 = vld [vmem:[#allocation2 + $0x24] sm:$0xf]  ;;  %v2631_v9 = vor.u32 %v2932_v2, %v2628_v3  ;;  %v2927_v40 = vld [vmem:[#allocation2 + $0x1f4] sm:$0xf0]  ;;  %v3233_v3 = vpack.c.bf16 %v67_v43, %v63_v42 }
  0x3b   :  { %1020 = vmatpush.bf16.msrb.mxu3 %v2791_v45  ;;  %972 = vmatpush.bf16.msrb.mxu1 %v2535_v59  ;;  %v2372_v10 = vld [vmem:[#allocation2 + $0x30] sm:$0xf0]  ;;  %v2900_v11 = vld [vmem:[#allocation2 + $0x124] sm:$0xf]  ;;  %v2759_v13 = vor.u32 %v2964_v4, %v2756_v5  ;;  %v2955_v52 = vld [vmem:[#allocation2 + $0x2d4] sm:$0xf0]  ;;  %v2603_v59 = vor.u32 %v2927_v40, %v2602_v39 }
  0x3c   :  { %v2500_v12 = vld [vmem:[#allocation2 + $0x130] sm:$0xf0]  ;;  %v2928_v14 = vld [vmem:[#allocation2 + $0x204] sm:$0xf]  ;;  %949 = vmatpush.bf16.msrb.mxu0 %v2391_v6  ;;  %v2375_v20 = vor.u32 %v2868_v7, %v2372_v10  ;;  %v2842_v55 = vld [vmem:[#allocation2 + $0x3c8] sm:$0xf]  ;;  %v2715_v4 = vor.u32 %v2955_v52, %v2714_v49 }
  0x3d   :  { %v2612_v15 = vld [vmem:[#allocation2 + $0x210] sm:$0xf0]  ;;  %v2960_v16 = vld [vmem:[#allocation2 + $0x304] sm:$0xf]  ;;  %v2503_v25 = vor.u32 %v2900_v11, %v2500_v12  ;;  %v2458_v61 = vld [vmem:[#allocation2 + $0xc8] sm:$0xf] }
  0x3e   :  { %997 = vmatpush.bf16.msrb.mxu2 %v2647_v60  ;;  %v2740_v17 = vld [vmem:[#allocation2 + $0x310] sm:$0xf0]  ;;  %v3203_v23 = vld [vmem:[%s4245_s0 + $0x80] sm:$0xff]  ;;  %v2615_v26 = vor.u32 %v2928_v14, %v2612_v15  ;;  %v2987_v60 = vld [vmem:[#allocation2 + $0x3d4] sm:$0xf0] }
  0x3f   :  { %1021 = vmatpush.bf16.msrb.mxu3 %v2775_v0  ;;  %v64_v24 = vld [vmem:[%s4245_s0 + $0xa0] sm:$0xff]  ;;  %973 = vmatpush.bf16.msrb.mxu1 %v2519_v8  ;;  %v2356_v28 = vld [vmem:[#allocation2 + $0x10] sm:$0xf0]  ;;  %v2743_v32 = vor.u32 %v2960_v16, %v2740_v17  ;;  %v2891_v62 = vld [vmem:[#allocation2 + $0xd4] sm:$0xf0]  ;;  %v2843_v5 = vor.u32 %v2987_v60, %v2842_v55 }
  0x40   :  { %v2864_v27 = vld [vmem:[#allocation2 + $0x4] sm:$0xf]  ;;  %v2484_v33 = vld [vmem:[#allocation2 + $0x110] sm:$0xf0]  ;;  %950 = vmatpush.bf16.msrb.mxu0 %v2375_v20  ;;  %v3227_v58 = vpack.c.bf16 %v64_v24, %v3203_v23  ;;  %v2586_v1 = vld [vmem:[#allocation2 + $0x1c8] sm:$0xf]  ;;  %v2459_v6 = vor.u32 %v2891_v62, %v2458_v61 }
  0x41   :  { %v2896_v29 = vld [vmem:[#allocation2 + $0x104] sm:$0xf]  ;;  %v62_v37 = vld [vmem:[%s4245_s0 + $0x90] sm:$0xff]  ;;  %v2359_v45 = vor.u32 %v2864_v27, %v2356_v28  ;;  %v2923_v2 = vld [vmem:[#allocation2 + $0x1d4] sm:$0xf0] }
  0x42   :  { %998 = vmatpush.bf16.msrb.mxu2 %v2631_v9  ;;  %v66_v41 = vld [vmem:[%s4245_s0 + $0xb0] sm:$0xff]  ;;  %v2487_v46 = vor.u32 %v2896_v29, %v2484_v33  ;;  %v2698_v7 = vld [vmem:[#allocation2 + $0x2a8] sm:$0xf]  ;;  %v2951_v8 = vld [vmem:[#allocation2 + $0x2b4] sm:$0xf0]  ;;  %v2587_v9 = vor.u32 %v2923_v2, %v2586_v1 }
  0x43   :  { %1022 = vmatpush.bf16.msrb.mxu3 %v2759_v13  ;;  %974 = vmatpush.bf16.msrb.mxu1 %v2503_v25  ;;  %v3231_v0 = vpack.c.bf16 %v66_v41, %v62_v37  ;;  %v2826_v10 = vld [vmem:[#allocation2 + $0x3a8] sm:$0xf]  ;;  %v2983_v11 = vld [vmem:[#allocation2 + $0x3b4] sm:$0xf0]  ;;  %v2699_v12 = vor.u32 %v2951_v8, %v2698_v7 }
  0x44   :  { %951 = vmatpush.bf16.msrb.mxu0 %v2359_v45  ;;  %v2442_v13 = vld [vmem:[#allocation2 + $0xa8] sm:$0xf]  ;;  %v2887_v14 = vld [vmem:[#allocation2 + $0xb4] sm:$0xf0]  ;;  %v2827_v16 = vor.u32 %v2983_v11, %v2826_v10 }
  0x45   :  { %v2570_v15 = vld [vmem:[#allocation2 + $0x1a8] sm:$0xf]  ;;  %v2443_v17 = vor.u32 %v2887_v14, %v2442_v13  ;;  %v2919_v18 = vld [vmem:[#allocation2 + $0x1b4] sm:$0xf0] }
  0x46   :  { %999 = vmatpush.bf16.msrb.mxu2 %v2615_v26  ;;  %v2682_v19 = vld [vmem:[#allocation2 + $0x288] sm:$0xf]  ;;  %v2947_v20 = vld [vmem:[#allocation2 + $0x294] sm:$0xf0]  ;;  %v2571_v21 = vor.u32 %v2919_v18, %v2570_v15 }
  0x47   :  { %1023 = vmatpush.bf16.msrb.mxu3 %v2743_v32  ;;  %975 = vmatpush.bf16.msrb.mxu1 %v2487_v46  ;;  %v2810_v22 = vld [vmem:[#allocation2 + $0x388] sm:$0xf]  ;;  %v2979_v24 = vld [vmem:[#allocation2 + $0x394] sm:$0xf0]  ;;  %v2683_v29 = vor.u32 %v2947_v20, %v2682_v19 }
  0x48   :  { %1040 = vmatpush.bf16.msra.mxu0 %v2475_v47  ;;  %890 = vmatmul.bf16.gmra.mxu1 %v3229_v63  ;;  %v2426_v25 = vld [vmem:[#allocation2 + $0x88] sm:$0xf]  ;;  %v2883_v26 = vld [vmem:[#allocation2 + $0x94] sm:$0xf0]  ;;  %v2811_v30 = vor.u32 %v2979_v24, %v2810_v22 }
  0x49   :  { %866 = vmatmul.bf16.gmra.mxu0 %v3227_v58  ;;  %914 = vmatmul.bf16.gmra.mxu2 %v3231_v0  ;;  %v2554_v27 = vld [vmem:[#allocation2 + $0x188] sm:$0xf]  ;;  %v2915_v28 = vld [vmem:[#allocation2 + $0x194] sm:$0xf0]  ;;  %v2427_v31 = vor.u32 %v2883_v26, %v2426_v25 }
  0x4a   :  { %1088 = vmatpush.bf16.msra.mxu2 %v2731_v34  ;;  %938 = vmatmul.bf16.gmra.mxu3 %v3233_v3  ;;  %v2666_v32 = vld [vmem:[#allocation2 + $0x268] sm:$0xf]  ;;  %v2943_v33 = vld [vmem:[#allocation2 + $0x274] sm:$0xf0]  ;;  %v2555_v35 = vor.u32 %v2915_v28, %v2554_v27 }
  0x4b   :  { %1112 = vmatpush.bf16.msra.mxu3 %v2859_v38  ;;  %1064 = vmatpush.bf16.msra.mxu1 %v2603_v59  ;;  %v2794_v34 = vld [vmem:[#allocation2 + $0x368] sm:$0xf]  ;;  %v2975_v36 = vld [vmem:[#allocation2 + $0x374] sm:$0xf0]  ;;  %v2667_v41 = vor.u32 %v2943_v33, %v2666_v32  ;;  %v2989_v32 = vld [vmem:[#allocation2 + $0x3ec] sm:$0xf] }
  0x4c   :  { %1041 = vmatpush.bf16.msra.mxu0 %v2459_v6  ;;  %v2410_v37 = vld [vmem:[#allocation2 + $0x68] sm:$0xf]  ;;  %v2879_v38 = vld [vmem:[#allocation2 + $0x74] sm:$0xf0]  ;;  %v2795_v42 = vor.u32 %v2975_v36, %v2794_v34  ;;  %v2860_v34 = vld [vmem:[#allocation2 + $0x3f8] sm:$0xf0] }
  0x4d   :  { %v2538_v39 = vld [vmem:[#allocation2 + $0x168] sm:$0xf]  ;;  %v2911_v40 = vld [vmem:[#allocation2 + $0x174] sm:$0xf0]  ;;  %v2411_v43 = vor.u32 %v2879_v38, %v2410_v37  ;;  %v2476_v36 = vld [vmem:[#allocation2 + $0xf8] sm:$0xf0]  ;;  %v2863_v37 = vor.u32 %v2989_v32, %v2860_v34 }
  0x4e   :  { %1089 = vmatpush.bf16.msra.mxu2 %v2715_v4  ;;  %v2650_v45 = vld [vmem:[#allocation2 + $0x248] sm:$0xf]  ;;  %v2939_v46 = vld [vmem:[#allocation2 + $0x254] sm:$0xf0]  ;;  %v2539_v47 = vor.u32 %v2911_v40, %v2538_v39  ;;  %v2925_v39 = vld [vmem:[#allocation2 + $0x1ec] sm:$0xf] }
  0x4f   :  { %1113 = vmatpush.bf16.msra.mxu3 %v2843_v5  ;;  %1065 = vmatpush.bf16.msra.mxu1 %v2587_v9  ;;  %v2651_v49 = vor.u32 %v2939_v46, %v2650_v45  ;;  %v2778_v52 = vld [vmem:[#allocation2 + $0x348] sm:$0xf]  ;;  %v2971_v55 = vld [vmem:[#allocation2 + $0x354] sm:$0xf0]  ;;  %v2604_v40 = vld [vmem:[#allocation2 + $0x1f8] sm:$0xf0] }
  0x50   :  { %1042 = vmatpush.bf16.msra.mxu0 %v2443_v17  ;;  %v2394_v59 = vld [vmem:[#allocation2 + $0x48] sm:$0xf]  ;;  %v2779_v60 = vor.u32 %v2971_v55, %v2778_v52  ;;  %v2875_v61 = vld [vmem:[#allocation2 + $0x54] sm:$0xf0]  ;;  %v2985_v45 = vld [vmem:[#allocation2 + $0x3cc] sm:$0xf] }
  0x51   :  { %v2522_v62 = vld [vmem:[#allocation2 + $0x148] sm:$0xf]  ;;  %v2907_v1 = vld [vmem:[#allocation2 + $0x154] sm:$0xf0]  ;;  %v2395_v2 = vor.u32 %v2875_v61, %v2394_v59  ;;  %v2844_v46 = vld [vmem:[#allocation2 + $0x3d8] sm:$0xf0] }
  0x52   :  { %1090 = vmatpush.bf16.msra.mxu2 %v2699_v12  ;;  %v2523_v4 = vor.u32 %v2907_v1, %v2522_v62  ;;  %v2634_v5 = vld [vmem:[#allocation2 + $0x228] sm:$0xf]  ;;  %v2935_v6 = vld [vmem:[#allocation2 + $0x234] sm:$0xf0]  ;;  %v2889_v52 = vld [vmem:[#allocation2 + $0xcc] sm:$0xf] }
  0x53   :  { %1114 = vmatpush.bf16.msra.mxu3 %v2827_v16  ;;  %1066 = vmatpush.bf16.msra.mxu1 %v2571_v21  ;;  %v2762_v7 = vld [vmem:[#allocation2 + $0x328] sm:$0xf]  ;;  %v2635_v8 = vor.u32 %v2935_v6, %v2634_v5  ;;  %v2967_v9 = vld [vmem:[#allocation2 + $0x334] sm:$0xf0]  ;;  %v2460_v55 = vld [vmem:[#allocation2 + $0xd8] sm:$0xf0] }
  0x54   :  { %1043 = vmatpush.bf16.msra.mxu0 %v2427_v31  ;;  %v2378_v10 = vld [vmem:[#allocation2 + $0x28] sm:$0xf]  ;;  %v2871_v11 = vld [vmem:[#allocation2 + $0x34] sm:$0xf0]  ;;  %v2763_v12 = vor.u32 %v2967_v9, %v2762_v7  ;;  %v2732_v31 = vld [vmem:[#allocation2 + $0x2f8] sm:$0xf0] }
  0x55   :  { %v2379_v13 = vor.u32 %v2871_v11, %v2378_v10  ;;  %v2506_v14 = vld [vmem:[#allocation2 + $0x128] sm:$0xf]  ;;  %v2903_v15 = vld [vmem:[#allocation2 + $0x134] sm:$0xf0]  ;;  %v2921_v59 = vld [vmem:[#allocation2 + $0x1cc] sm:$0xf] }
  0x56   :  { %1091 = vmatpush.bf16.msra.mxu2 %v2683_v29  ;;  %v2618_v16 = vld [vmem:[#allocation2 + $0x208] sm:$0xf]  ;;  %v2507_v17 = vor.u32 %v2903_v15, %v2506_v14  ;;  %v2931_v18 = vld [vmem:[#allocation2 + $0x214] sm:$0xf0]  ;;  %v2588_v61 = vld [vmem:[#allocation2 + $0x1d8] sm:$0xf0] }
  0x57   :  { %1115 = vmatpush.bf16.msra.mxu3 %v2811_v30  ;;  %1067 = vmatpush.bf16.msra.mxu1 %v2555_v35  ;;  %v2746_v19 = vld [vmem:[#allocation2 + $0x308] sm:$0xf]  ;;  %v2963_v20 = vld [vmem:[#allocation2 + $0x314] sm:$0xf0]  ;;  %v2619_v21 = vor.u32 %v2931_v18, %v2618_v16  ;;  %v2957_v30 = vld [vmem:[#allocation2 + $0x2ec] sm:$0xf] }
  0x58   :  { %1044 = vmatpush.bf16.msra.mxu0 %v2411_v43  ;;  %976 = vmatmul.bf16.vlgmr.msrb.gmra.mxu1 %v3154_v53  ;;  %v2362_v22 = vld [vmem:[#allocation2 + $0x8] sm:$0xf]  ;;  %v2867_v24 = vld [vmem:[#allocation2 + $0x14] sm:$0xf0]  ;;  %v2747_v26 = vor.u32 %v2963_v20, %v2746_v19  ;;  %v2735_v33 = vor.u32 %v2957_v30, %v2732_v31  ;;  %v2893_v35 = vld [vmem:[#allocation2 + $0xec] sm:$0xf] }
  0x59   :  { %952 = vmatmul.bf16.vlgmr.msrb.gmra.mxu0 %v3152_v48  ;;  %1000 = vmatmul.bf16.vlgmr.msrb.gmra.mxu2 %v3156_v54  ;;  %v2490_v25 = vld [vmem:[#allocation2 + $0x108] sm:$0xf]  ;;  %v2899_v27 = vld [vmem:[#allocation2 + $0x114] sm:$0xf0]  ;;  %v2363_v28 = vor.u32 %v2867_v24, %v2362_v22  ;;  %v2479_v38 = vor.u32 %v2893_v35, %v2476_v36  ;;  %v2716_v43 = vld [vmem:[#allocation2 + $0x2d8] sm:$0xf0] }
  0x5a   :  { %1092 = vmatpush.bf16.msra.mxu2 %v2667_v41  ;;  %1024 = vmatmul.bf16.vlgmr.msrb.gmra.mxu3 %v3158_v57  ;;  %v2491_v29 = vor.u32 %v2899_v27, %v2490_v25  ;;  %v2953_v41 = vld [vmem:[#allocation2 + $0x2cc] sm:$0xf]  ;;  %v2700_v1 = vld [vmem:[#allocation2 + $0x2b8] sm:$0xf0] }
  0x5b   :  { %1116 = vmatpush.bf16.msra.mxu3 %v2795_v42  ;;  %1068 = vmatpush.bf16.msra.mxu1 %v2539_v47  ;;  %v2607_v42 = vor.u32 %v2925_v39, %v2604_v40  ;;  %v2719_v47 = vor.u32 %v2953_v41, %v2716_v43  ;;  %v2949_v62 = vld [vmem:[#allocation2 + $0x2ac] sm:$0xf]  ;;  %v2828_v5 = vld [vmem:[#allocation2 + $0x3b8] sm:$0xf0] }
  0x5c   :  { %1045 = vmatpush.bf16.msra.mxu0 %v2395_v2  ;;  %v2591_v2 = vor.u32 %v2921_v59, %v2588_v61  ;;  %v2703_v6 = vor.u32 %v2949_v62, %v2700_v1  ;;  %v2444_v9 = vld [vmem:[#allocation2 + $0xb8] sm:$0xf0]  ;;  %v2917_v10 = vld [vmem:[#allocation2 + $0x1ac] sm:$0xf] }
  0x5d   :  { %v2684_v14 = vld [vmem:[#allocation2 + $0x298] sm:$0xf0]  ;;  %v2881_v19 = vld [vmem:[#allocation2 + $0x8c] sm:$0xf] }
  0x5e   :  { %1093 = vmatpush.bf16.msra.mxu2 %v2651_v49  ;;  %v2847_v49 = vor.u32 %v2985_v45, %v2844_v46  ;;  %v2812_v18 = vld [vmem:[#allocation2 + $0x398] sm:$0xf0]  ;;  %v2913_v22 = vld [vmem:[#allocation2 + $0x18c] sm:$0xf] }
  0x5f   :  { %1117 = vmatpush.bf16.msra.mxu3 %v2779_v60  ;;  %1069 = vmatpush.bf16.msra.mxu1 %v2523_v4  ;;  %v2463_v60 = vor.u32 %v2889_v52, %v2460_v55  ;;  %v2981_v4 = vld [vmem:[#allocation2 + $0x3ac] sm:$0xf]  ;;  %v2556_v24 = vld [vmem:[#allocation2 + $0x198] sm:$0xf0] }
  0x60   :  { %1046 = vmatpush.bf16.msra.mxu0 %v2379_v13  ;;  %v2831_v7 = vor.u32 %v2981_v4, %v2828_v5  ;;  %v2945_v13 = vld [vmem:[#allocation2 + $0x28c] sm:$0xf]  ;;  %v2796_v31 = vld [vmem:[#allocation2 + $0x378] sm:$0xf0] }
  0x61   :  { %v2687_v16 = vor.u32 %v2945_v13, %v2684_v14  ;;  %v2941_v27 = vld [vmem:[#allocation2 + $0x26c] sm:$0xf]  ;;  %v2540_v36 = vld [vmem:[#allocation2 + $0x178] sm:$0xf0] }
  0x62   :  { %1094 = vmatpush.bf16.msra.mxu2 %v2635_v8  ;;  %v2885_v8 = vld [vmem:[#allocation2 + $0xac] sm:$0xf]  ;;  %v2652_v40 = vld [vmem:[#allocation2 + $0x258] sm:$0xf0] }
  0x63   :  { %1118 = vmatpush.bf16.msra.mxu3 %v2763_v12  ;;  %1070 = vmatpush.bf16.msra.mxu1 %v2507_v17  ;;  %v2447_v11 = vor.u32 %v2885_v8, %v2444_v9  ;;  %v2572_v12 = vld [vmem:[#allocation2 + $0x1b8] sm:$0xf0]  ;;  %v2977_v17 = vld [vmem:[#allocation2 + $0x38c] sm:$0xf] }
  0x64   :  { %1047 = vmatpush.bf16.msra.mxu0 %v2363_v28  ;;  %v2575_v15 = vor.u32 %v2917_v10, %v2572_v12  ;;  %v2815_v20 = vor.u32 %v2977_v17, %v2812_v18  ;;  %v2668_v28 = vld [vmem:[#allocation2 + $0x278] sm:$0xf0]  ;;  %v2877_v32 = vld [vmem:[#allocation2 + $0x6c] sm:$0xf] }
  0x65   :  { %v2671_v30 = vor.u32 %v2941_v27, %v2668_v28  ;;  %v2909_v35 = vld [vmem:[#allocation2 + $0x16c] sm:$0xf]  ;;  %v2780_v43 = vld [vmem:[#allocation2 + $0x358] sm:$0xf0] }
  0x66   :  { %1095 = vmatpush.bf16.msra.mxu2 %v2619_v21  ;;  %v2428_v21 = vld [vmem:[#allocation2 + $0x98] sm:$0xf0]  ;;  %v2937_v39 = vld [vmem:[#allocation2 + $0x24c] sm:$0xf] }
  0x67   :  { %1119 = vmatpush.bf16.msra.mxu3 %v2747_v26  ;;  %1071 = vmatpush.bf16.msra.mxu1 %v2491_v29  ;;  %v2431_v25 = vor.u32 %v2881_v19, %v2428_v21  ;;  %v2559_v26 = vor.u32 %v2913_v22, %v2556_v24  ;;  %v2973_v29 = vld [vmem:[#allocation2 + $0x36c] sm:$0xf]  ;;  %v2655_v41 = vor.u32 %v2937_v39, %v2652_v40  ;;  %v2524_v52 = vld [vmem:[#allocation2 + $0x158] sm:$0xf0] }
  0x68   :  { %981 = vmatmul.bf16.gmra.mxu1 %v3190_v50  ;;  %1136 = vmatpush.bf16.msrb.mxu0 %v2479_v38  ;;  %v2799_v34 = vor.u32 %v2973_v29, %v2796_v31  ;;  %v2543_v38 = vor.u32 %v2909_v35, %v2540_v36  ;;  %v2873_v45 = vld [vmem:[#allocation2 + $0x4c] sm:$0xf]  ;;  %v2636_v61 = vld [vmem:[#allocation2 + $0x238] sm:$0xf0] }
  0x69   :  { %957 = vmatmul.bf16.gmra.mxu0 %v3188_v44  ;;  %1005 = vmatmul.bf16.gmra.mxu2 %v3192_v51  ;;  %v2965_v62 = vld [vmem:[#allocation2 + $0x32c] sm:$0xf]  ;;  %v2380_v5 = vld [vmem:[#allocation2 + $0x38] sm:$0xf0] }
  0x6a   :  { %1029 = vmatmul.bf16.gmra.mxu3 %v3194_v56  ;;  %1184 = vmatpush.bf16.msrb.mxu2 %v2735_v33  ;;  %v2412_v33 = vld [vmem:[#allocation2 + $0x78] sm:$0xf0]  ;;  %v2869_v4 = vld [vmem:[#allocation2 + $0x2c] sm:$0xf] }
  0x6b   :  { %1208 = vmatpush.bf16.msrb.mxu3 %v2863_v37  ;;  %1160 = vmatpush.bf16.msrb.mxu1 %v2607_v42  ;;  %v2415_v37 = vor.u32 %v2877_v32, %v2412_v33  ;;  %v2969_v42 = vld [vmem:[#allocation2 + $0x34c] sm:$0xf]  ;;  %v2508_v9 = vld [vmem:[#allocation2 + $0x138] sm:$0xf0] }
  0x6c   :  { %1137 = vmatpush.bf16.msrb.mxu0 %v2463_v60  ;;  %v2783_v46 = vor.u32 %v2969_v42, %v2780_v43  ;;  %v2933_v60 = vld [vmem:[#allocation2 + $0x22c] sm:$0xf]  ;;  %v2620_v12 = vld [vmem:[#allocation2 + $0x218] sm:$0xf0] }
  0x6d   :  { %v2639_v1 = vor.u32 %v2933_v60, %v2636_v61  ;;  %v2901_v8 = vld [vmem:[#allocation2 + $0x12c] sm:$0xf]  ;;  %v2364_v18 = vld [vmem:[#allocation2 + $0x18] sm:$0xf0] }
  0x6e   :  { %1185 = vmatpush.bf16.msrb.mxu2 %v2719_v47  ;;  %v2396_v47 = vld [vmem:[#allocation2 + $0x58] sm:$0xf0]  ;;  %v2929_v10 = vld [vmem:[#allocation2 + $0x20c] sm:$0xf] }
  0x6f   :  { %1209 = vmatpush.bf16.msrb.mxu3 %v2847_v49  ;;  %1161 = vmatpush.bf16.msrb.mxu1 %v2591_v2  ;;  %v2905_v49 = vld [vmem:[#allocation2 + $0x14c] sm:$0xf]  ;;  %v2399_v55 = vor.u32 %v2873_v45, %v2396_v47  ;;  %v2764_v2 = vld [vmem:[#allocation2 + $0x338] sm:$0xf0]  ;;  %v2623_v13 = vor.u32 %v2929_v10, %v2620_v12 }
  0x70   :  { %1138 = vmatpush.bf16.msrb.mxu0 %v2447_v11  ;;  %v2527_v59 = vor.u32 %v2905_v49, %v2524_v52  ;;  %v2511_v11 = vor.u32 %v2901_v8, %v2508_v9  ;;  %v2961_v14 = vld [vmem:[#allocation2 + $0x30c] sm:$0xf] }
  0x71   :  { %v2897_v19 = vld [vmem:[#allocation2 + $0x10c] sm:$0xf] }
  0x72   :  { %1186 = vmatpush.bf16.msrb.mxu2 %v2703_v6  ;;  %v2767_v6 = vor.u32 %v2965_v62, %v2764_v2 }
  0x73   :  { %1210 = vmatpush.bf16.msrb.mxu3 %v2831_v7  ;;  %1162 = vmatpush.bf16.msrb.mxu1 %v2575_v15  ;;  %v2383_v7 = vor.u32 %v2869_v4, %v2380_v5  ;;  %v2748_v15 = vld [vmem:[#allocation2 + $0x318] sm:$0xf0] }
  0x74   :  { %1139 = vmatpush.bf16.msrb.mxu0 %v2431_v25  ;;  %v2751_v17 = vor.u32 %v2961_v14, %v2748_v15 }
  0x76   :  { %1187 = vmatpush.bf16.msrb.mxu2 %v2687_v16  ;;  %v2865_v16 = vld [vmem:[#allocation2 + $0xc] sm:$0xf] }
  0x77   :  { %1211 = vmatpush.bf16.msrb.mxu3 %v2815_v20  ;;  %1163 = vmatpush.bf16.msrb.mxu1 %v2559_v26  ;;  %v2492_v20 = vld [vmem:[#allocation2 + $0x118] sm:$0xf0]  ;;  %v2367_v21 = vor.u32 %v2865_v16, %v2364_v18 }
  0x78   :  { %986 = vmatmul.bf16.gmra.mxu1 %v3229_v63  ;;  %1140 = vmatpush.bf16.msrb.mxu0 %v2415_v37  ;;  %v2495_v22 = vor.u32 %v2897_v19, %v2492_v20 }
  0x79   :  { %962 = vmatmul.bf16.gmra.mxu0 %v3227_v58  ;;  %1010 = vmatmul.bf16.gmra.mxu2 %v3231_v0 }
  0x7a   :  { %1034 = vmatmul.bf16.gmra.mxu3 %v3233_v3  ;;  %1188 = vmatpush.bf16.msrb.mxu2 %v2671_v30 }
  0x7b   :  { %1212 = vmatpush.bf16.msrb.mxu3 %v2799_v34  ;;  %1164 = vmatpush.bf16.msrb.mxu1 %v2543_v38 }
  0x7c   :  { %1141 = vmatpush.bf16.msrb.mxu0 %v2399_v55 }
  0x7e   :  { %1189 = vmatpush.bf16.msrb.mxu2 %v2655_v41 }
  0x7f   :  { %1213 = vmatpush.bf16.msrb.mxu3 %v2783_v46  ;;  %1165 = vmatpush.bf16.msrb.mxu1 %v2527_v59 }
  0x80   :  { %1142 = vmatpush.bf16.msrb.mxu0 %v2383_v7 }
  0x82   :  { %1190 = vmatpush.bf16.msrb.mxu2 %v2639_v1 }
  0x83   :  { %1214 = vmatpush.bf16.msrb.mxu3 %v2767_v6  ;;  %1166 = vmatpush.bf16.msrb.mxu1 %v2511_v11 }
  0x84   :  { %1143 = vmatpush.bf16.msrb.mxu0 %v2367_v21 }
  0x86   :  { %1191 = vmatpush.bf16.msrb.mxu2 %v2623_v13 }
  0x87   :  { %1215 = vmatpush.bf16.msrb.mxu3 %v2751_v17  ;;  %1167 = vmatpush.bf16.msrb.mxu1 %v2495_v22 }
  0x88   :  { %1072 = vmatmul.bf16.vlgmr.msra.gmra.mxu1 %v3154_v53 }
  0x89   :  { %1048 = vmatmul.bf16.vlgmr.msra.gmra.mxu0 %v3152_v48  ;;  %1096 = vmatmul.bf16.vlgmr.msra.gmra.mxu2 %v3156_v54 }
  0x8a   :  { %1120 = vmatmul.bf16.vlgmr.msra.gmra.mxu3 %v3158_v57 }
  0x98   :  { %1077 = vmatmul.bf16.gmra.mxu1 %v3190_v50 }
  0x99   :  { %1053 = vmatmul.bf16.gmra.mxu0 %v3188_v44  ;;  %1101 = vmatmul.bf16.gmra.mxu2 %v3192_v51 }
  0x9a   :  { %1125 = vmatmul.bf16.gmra.mxu3 %v3194_v56 }
  0xa5   :  { %v881_v25 = vpop.f32.mrf.mxu1 }
  0xa6   :  { %v857_v24 = vpop.f32.mrf.mxu0 }
  0xa7   :  { %v882_v26 = vadd.f32 %v881_v25, %v857_v24 }
  0xa8   :  { %1082 = vmatmul.bf16.gmra.mxu1 %v3229_v63 }
  0xa9   :  { %1058 = vmatmul.bf16.gmra.mxu0 %v3227_v58  ;;  %1106 = vmatmul.bf16.gmra.mxu2 %v3231_v0 }
  0xaa   :  { %1130 = vmatmul.bf16.gmra.mxu3 %v3233_v3 }
  0xac   :  { %v905_v27 = vpop.f32.mrf.mxu2 }
  0xad   :  { %v906_v28 = vadd.f32 %v905_v27, %v882_v26  ;;  %v929_v29 = vpop.f32.mrf.mxu3  ;;  %v883_v31 = vpop.f32.mrf.mxu1 }
  0xae   :  { %v859_v30 = vpop.f32.mrf.mxu0 }
  0xaf   :  { %v930_v32 = vadd.f32 %v929_v29, %v906_v28  ;;  %v884_v33 = vadd.f32 %v883_v31, %v859_v30 }
  0xb1   :  { %v1288_v52 = vmul.f32 0.2595, %v930_v32 }
  0xb4   :  { %v907_v34 = vpop.f32.mrf.mxu2 }
  0xb5   :  { %v908_v35 = vadd.f32 %v907_v34, %v884_v33  ;;  %v931_v36 = vpop.f32.mrf.mxu3  ;;  %v886_v38 = vpop.f32.mrf.mxu1 }
  0xb6   :  { %v862_v37 = vpop.f32.mrf.mxu0 }
  0xb7   :  { %v932_v39 = vadd.f32 %v931_v36, %v908_v35  ;;  %v887_v40 = vadd.f32 %v886_v38, %v862_v37 }
  0xb8   :  { %1168 = vmatmul.bf16.vlgmr.msrb.gmra.mxu1 %v3154_v53 }
  0xb9   :  { %1144 = vmatmul.bf16.vlgmr.msrb.gmra.mxu0 %v3152_v48  ;;  %1192 = vmatmul.bf16.vlgmr.msrb.gmra.mxu2 %v3156_v54  ;;  %v1292_v5 = vmul.f32 0.2595, %v932_v39 }
  0xba   :  { %1216 = vmatmul.bf16.vlgmr.msrb.gmra.mxu3 %v3158_v57 }
  0xbc   :  { %v910_v41 = vpop.f32.mrf.mxu2 }
  0xbd   :  { %v911_v42 = vadd.f32 %v910_v41, %v887_v40  ;;  %v934_v43 = vpop.f32.mrf.mxu3  ;;  %v888_v46 = vpop.f32.mrf.mxu1 }
  0xbe   :  { %v864_v45 = vpop.f32.mrf.mxu0 }
  0xbf   :  { %v935_v47 = vadd.f32 %v934_v43, %v911_v42  ;;  %v889_v49 = vadd.f32 %v888_v46, %v864_v45 }
  0xc1   :  { %v1232_v55 = vmul.f32 0.4038, %v935_v47  ;;  %v1264_v59 = vadd.f32 %v935_v47, %v930_v32  ;;  %v1296_v60 = vmul.f32 0.0436, %v935_v47 }
  0xc3   :  { %v1240_v61 = vadd.f32 %v1232_v55, %v930_v32  ;;  %v1304_v62 = vadd.f32 %v1296_v60, %v1288_v52 }
  0xc4   :  { %v912_v48 = vpop.f32.mrf.mxu2 }
  0xc5   :  { %v913_v1 = vadd.f32 %v912_v48, %v889_v49  ;;  %v936_v53 = vpop.f32.mrf.mxu3  ;;  %v891_v54 = vpop.f32.mrf.mxu1 }
  0xc6   :  { %v867_v2 = vpop.f32.mrf.mxu0 }
  0xc7   :  { %v937_v4 = vadd.f32 %v936_v53, %v913_v1  ;;  %v892_v57 = vadd.f32 %v891_v54, %v867_v2 }
  0xc8   :  { %1173 = vmatmul.bf16.gmra.mxu1 %v3190_v50 }
  0xc9   :  { %1149 = vmatmul.bf16.gmra.mxu0 %v3188_v44  ;;  %v1236_v6 = vmul.f32 0.4038, %v937_v4  ;;  %v1268_v7 = vadd.f32 %v937_v4, %v932_v39  ;;  %v1300_v8 = vmul.f32 0.0436, %v937_v4  ;;  %1197 = vmatmul.bf16.gmra.mxu2 %v3192_v51 }
  0xca   :  { %1221 = vmatmul.bf16.gmra.mxu3 %v3194_v56 }
  0xcb   :  { %v1244_v9 = vadd.f32 %v1236_v6, %v932_v39  ;;  %v1308_v10 = vadd.f32 %v1300_v8, %v1292_v5 }
  0xcc   :  { %v915_v11 = vpop.f32.mrf.mxu2 }
  0xcd   :  { %v916_v12 = vadd.f32 %v915_v11, %v892_v57  ;;  %v939_v13 = vpop.f32.mrf.mxu3  ;;  %v893_v15 = vpop.f32.mrf.mxu1 }
  0xce   :  { %v869_v14 = vpop.f32.mrf.mxu0 }
  0xcf   :  { %v940_v16 = vadd.f32 %v939_v13, %v916_v12  ;;  %v894_v17 = vadd.f32 %v893_v15, %v869_v14 }
  0xd1   :  { %v1248_v44 = vmul.f32 0.3035, %v940_v16  ;;  %v1272_v18 = vmul.f32 0.1263, %v940_v16  ;;  %v3271_v19 = vadd.f32 %v1304_v62, %v940_v16 }
  0xd3   :  { %v3273_v20 = vadd.f32 %v1248_v44, %v1240_v61  ;;  %v3275_v50 = vadd.f32 %v1272_v18, %v1264_v59 }
  0xd4   :  { %v917_v51 = vpop.f32.mrf.mxu2 }
  0xd5   :  { %v918_v21 = vadd.f32 %v917_v51, %v894_v17  ;;  %v941_v56 = vpop.f32.mrf.mxu3  ;;  %v977_v24 = vpop.f32.mrf.mxu1 }
  0xd6   :  { %v953_v22 = vpop.f32.mrf.mxu0 }
  0xd7   :  { %v942_v25 = vadd.f32 %v941_v56, %v918_v21  ;;  %v978_v26 = vadd.f32 %v977_v24, %v953_v22 }
  0xd8   :  { %1178 = vmatmul.bf16.gmra.mxu1 %v3229_v63 }
  0xd9   :  { %1154 = vmatmul.bf16.gmra.mxu0 %v3227_v58  ;;  %v1252_v27 = vmul.f32 0.3035, %v942_v25  ;;  %v1276_v28 = vmul.f32 0.1263, %v942_v25  ;;  %v3278_v29 = vadd.f32 %v1308_v10, %v942_v25  ;;  %1202 = vmatmul.bf16.gmra.mxu2 %v3231_v0 }
  0xda   :  { %1226 = vmatmul.bf16.gmra.mxu3 %v3233_v3 }
  0xdb   :  { %v3283_v30 = vadd.f32 %v1252_v27, %v1244_v9  ;;  %v3285_v31 = vadd.f32 %v1276_v28, %v1268_v7 }
  0xdc   :  { %v1001_v32 = vpop.f32.mrf.mxu2 }
  0xdd   :  { %v1002_v33 = vadd.f32 %v1001_v32, %v978_v26  ;;  %v1025_v34 = vpop.f32.mrf.mxu3  ;;  %v979_v36 = vpop.f32.mrf.mxu1 }
  0xde   :  { %v955_v35 = vpop.f32.mrf.mxu0 }
  0xdf   :  { %v1026_v58 = vadd.f32 %v1025_v34, %v1002_v33  ;;  %v980_v37 = vadd.f32 %v979_v36, %v955_v35 }
  0xe1   :  { %v1289_v55 = vmul.f32 0.2595, %v1026_v58 }
  0xe4   :  { %v1003_v38 = vpop.f32.mrf.mxu2 }
  0xe5   :  { %v1004_v39 = vadd.f32 %v1003_v38, %v980_v37  ;;  %v1027_v40 = vpop.f32.mrf.mxu3  ;;  %v982_v63 = vpop.f32.mrf.mxu1 }
  0xe6   :  { %v958_v41 = vpop.f32.mrf.mxu0 }
  0xe7   :  { %v1028_v42 = vadd.f32 %v1027_v40, %v1004_v39  ;;  %v983_v0 = vadd.f32 %v982_v63, %v958_v41 }
  0xe9   :  { %v1293_v6 = vmul.f32 0.2595, %v1028_v42 }
  0xec   :  { %v1006_v43 = vpop.f32.mrf.mxu2 }
  0xed   :  { %v1007_v3 = vadd.f32 %v1006_v43, %v983_v0  ;;  %v1030_v45 = vpop.f32.mrf.mxu3  ;;  %v984_v47 = vpop.f32.mrf.mxu1 }
  0xee   :  { %v960_v46 = vpop.f32.mrf.mxu0 }
  0xef   :  { %v1031_v49 = vadd.f32 %v1030_v45, %v1007_v3  ;;  %v985_v52 = vadd.f32 %v984_v47, %v960_v46 }
  0xf1   :  { %v1233_v59 = vmul.f32 0.4038, %v1031_v49  ;;  %v1265_v60 = vadd.f32 %v1031_v49, %v1026_v58  ;;  %v1297_v61 = vmul.f32 0.0436, %v1031_v49 }
  0xf3   :  { %v1241_v62 = vadd.f32 %v1233_v59, %v1026_v58  ;;  %v1305_v48 = vadd.f32 %v1297_v61, %v1289_v55 }
  0xf4   :  { %v1008_v1 = vpop.f32.mrf.mxu2 }
  0xf5   :  { %v1009_v53 = vadd.f32 %v1008_v1, %v985_v52  ;;  %v1032_v2 = vpop.f32.mrf.mxu3  ;;  %v987_v4 = vpop.f32.mrf.mxu1 }
  0xf6   :  { %v963_v54 = vpop.f32.mrf.mxu0 }
  0xf7   :  { %v1033_v57 = vadd.f32 %v1032_v2, %v1009_v53  ;;  %v988_v5 = vadd.f32 %v987_v4, %v963_v54 }
  0xf9   :  { %v1237_v7 = vmul.f32 0.4038, %v1033_v57  ;;  %v1269_v8 = vadd.f32 %v1033_v57, %v1028_v42  ;;  %v1301_v9 = vmul.f32 0.0436, %v1033_v57  ;;  %v3318_v57 = vld [vmem:[%s4247_s2] sm:$0xf] }
  0xfb   :  { %v1245_v10 = vadd.f32 %v1237_v7, %v1028_v42  ;;  %v1309_v11 = vadd.f32 %v1301_v9, %v1293_v6  ;;  %v1322_v6 = vperm.slane %v3318_v57, 0 }
  0xfc   :  { %v1011_v12 = vpop.f32.mrf.mxu2 }
  0xfd   :  { %v1012_v13 = vadd.f32 %v1011_v12, %v988_v5  ;;  %v1035_v14 = vpop.f32.mrf.mxu3  ;;  %v989_v16 = vpop.f32.mrf.mxu1  ;;  %v1338_v12 = vadd.f32 %v1322_v6, %v3275_v50 }
  0xfe   :  { %v965_v15 = vpop.f32.mrf.mxu0 }
  0xff   :  { %v1036_v17 = vadd.f32 %v1035_v14, %v1012_v13  ;;  %v990_v44 = vadd.f32 %v989_v16, %v965_v15  ;;  %v1330_v13 = vadd.f32 %v1322_v6, %v3273_v20  ;;  %v1334_v20 = vadd.f32 %v1322_v6, %v3283_v30 }
 0x101   :  { %v1249_v18 = vmul.f32 0.3035, %v1036_v17  ;;  %v1273_v51 = vmul.f32 0.1263, %v1036_v17  ;;  %v3287_v21 = vadd.f32 %v1305_v48, %v1036_v17  ;;  %v1354_v50 = vmax.f32 %v1330_v13, 0.0 }
 0x103   :  { %v3289_v56 = vadd.f32 %v1249_v18, %v1241_v62  ;;  %v3291_v22 = vadd.f32 %v1273_v51, %v1265_v60  ;;  %v1362_v18 = vmax.f32 %v1338_v12, 0.0  ;;  %v1342_v51 = vadd.f32 %v1322_v6, %v3285_v31 }
 0x104   :  { %v1013_v24 = vpop.f32.mrf.mxu2 }
 0x105   :  { %v1014_v25 = vadd.f32 %v1013_v24, %v990_v44  ;;  %v1037_v26 = vpop.f32.mrf.mxu3  ;;  %v1073_v28 = vpop.f32.mrf.mxu1  ;;  %v1350_v24 = vadd.f32 %v1322_v6, %v3278_v29  ;;  %v3025_v29 = vld [vmem:[%s4245_s0] sm:$0xff] }
 0x106   :  { %v1049_v27 = vpop.f32.mrf.mxu0 }
 0x107   :  { %v1038_v32 = vadd.f32 %v1037_v26, %v1014_v25  ;;  %v1074_v33 = vadd.f32 %v1073_v28, %v1049_v27  ;;  %v1418_v27 = vmul.f32 0.5, %v3203_v23  ;;  %v3024_v28 = vld [vmem:[%s4245_s0 + $0x40] sm:$0xff] }
 0x109   :  { %v1253_v34 = vmul.f32 0.3035, %v1038_v32  ;;  %v1277_v35 = vmul.f32 0.1263, %v1038_v32  ;;  %v3293_v36 = vadd.f32 %v1309_v11, %v1038_v32  ;;  %v1410_v32 = vmul.f32 0.5, %v3024_v28 }
 0x10b   :  { %v3295_v58 = vadd.f32 %v1253_v34, %v1245_v10  ;;  %v3297_v37 = vadd.f32 %v1277_v35, %v1269_v8  ;;  %v1346_v10 = vadd.f32 %v1322_v6, %v3271_v19  ;;  %v1323_v19 = vperm.slane %v3318_v57, 1 }
 0x10c   :  { %v1097_v38 = vpop.f32.mrf.mxu2  ;;  %v1386_v34 = vmul.f32 0.5, %v1362_v18  ;;  %v1402_v35 = vmul.f32 0.5, %v3025_v29 }
 0x10d   :  { %v1098_v39 = vadd.f32 %v1097_v38, %v1074_v33  ;;  %v1121_v40 = vpop.f32.mrf.mxu3  ;;  %v1075_v63 = vpop.f32.mrf.mxu1  ;;  %v1370_v15 = vmax.f32 %v1346_v10, 0.0  ;;  %v1366_v38 = vmax.f32 %v1342_v51, 0.0  ;;  %v1347_v30 = vadd.f32 %v1323_v19, %v3287_v21  ;;  %v3029_v51 = vld [vmem:[%s4245_s0 + $0x88] sm:$0xff] }
 0x10e   :  { %v1051_v41 = vpop.f32.mrf.mxu0 }
 0x10f   :  { %v3299_v42 = vadd.f32 %v1121_v40, %v1098_v39  ;;  %v1076_v0 = vadd.f32 %v1075_v63, %v1051_v41  ;;  %v1394_v31 = vmul.f32 0.5, %v1370_v15  ;;  %v1374_v39 = vmax.f32 %v1350_v24, 0.0 }
 0x110   :  { %v1378_v40 = vmul.f32 0.5, %v1354_v50  ;;  %v1339_v41 = vadd.f32 %v1323_v19, %v3291_v22  ;;  %v1331_v63 = vadd.f32 %v1323_v19, %v3289_v56  ;;  %v3028_v22 = vld [vmem:[%s4245_s0 + $0x20] sm:$0xff]  ;;  %v1371_v10 = vmax.f32 %v1347_v30, 0.0  ;;  %v3030_v50 = vld [vmem:[%s4245_s0 + $0x48] sm:$0xff] }
 0x111   :  { %v3371_v56 = vmul.f32 0.5, %v3028_v22  ;;  %v1398_v6 = vmul.f32 0.5, %v1374_v39  ;;  %v1390_v13 = vmul.f32 0.5, %v1366_v38  ;;  %v1290_v15 = vmul.f32 0.2595, %v3299_v42  ;;  %v3032_v39 = vld [vmem:[%s4245_s0 + $0xa8] sm:$0xff] }
 0x112   :  { %v3381_v12 = vadd.f32 %v1402_v35, %v1378_v40  ;;  %v1363_v18 = vmax.f32 %v1339_v41, 0.0  ;;  %v1419_v24 = vmul.f32 0.5, %v3029_v51  ;;  %v1395_v38 = vmul.f32 0.5, %v1371_v10 }
 0x113   :  { %v1423_v30 = vmul.f32 0.5, %v3032_v39 }
 0x114   :  { %v1099_v43 = vpop.f32.mrf.mxu2 }
 0x115   :  { %v1100_v3 = vadd.f32 %v1099_v43, %v1076_v0  ;;  %v1123_v45 = vpop.f32.mrf.mxu3  ;;  %v1078_v47 = vpop.f32.mrf.mxu1  ;;  %v1358_v0 = vmax.f32 %v1334_v20, 0.0  ;;  %v3031_v20 = vld [vmem:[%s4245_s0 + $0x8] sm:$0xff] }
 0x116   :  { %v1054_v46 = vpop.f32.mrf.mxu0 }
 0x117   :  { %v3301_v49 = vadd.f32 %v1123_v45, %v1100_v3  ;;  %v1079_v11 = vadd.f32 %v1078_v47, %v1054_v46  ;;  %v3026_v3 = vld [vmem:[%s4245_s0 + $0xa0] sm:$0xff]  ;;  %v1351_v47 = vadd.f32 %v1323_v19, %v3293_v36  ;;  %v1355_v36 = vmax.f32 %v1331_v63, 0.0 }
 0x118   :  { %v3361_v45 = vmul.f32 0.5, %v3026_v3  ;;  %v3027_v46 = vld [vmem:[%s4245_s0 + $0x60] sm:$0xff]  ;;  %v1382_v28 = vmul.f32 0.5, %v1358_v0 }
 0x119   :  { %v3366_v21 = vmul.f32 0.5, %v3027_v46  ;;  %v1379_v41 = vmul.f32 0.5, %v1355_v36 }
 0x11c   :  { %v1102_v52 = vpop.f32.mrf.mxu2 }
 0x11d   :  { %v1126_v55 = vpop.f32.mrf.mxu3  ;;  %v3305_v60 = vpop.f32.mrf.mxu1  ;;  %v1103_v16 = vadd.f32 %v1102_v52, %v1079_v11 }
 0x11e   :  { %v3303_v59 = vpop.f32.mrf.mxu0 }
 0x11f   :  { %v3348_v33 = vadd.f32 %v1126_v55, %v1103_v16  ;;  %v1081_v35 = vadd.f32 %v3305_v60, %v3303_v59 }
 0x121   :  { %v1298_v52 = vmul.f32 0.0436, %v3348_v33  ;;  %v1234_v29 = vmul.f32 0.4038, %v3348_v33 }
 0x124   :  { %v3307_v61 = vpop.f32.mrf.mxu2 }
 0x125   :  { %v3309_v62 = vpop.f32.mrf.mxu3  ;;  %v1083_v1 = vpop.f32.mrf.mxu1 }
 0x126   :  { %v1059_v48 = vpop.f32.mrf.mxu0 }
 0x127   :  { %v1084_v26 = vadd.f32 %v1083_v1, %v1059_v48  ;;  %v3377_v1 = vadd.f32 %v1418_v27, %v1394_v31  ;;  %v1403_v27 = vmul.f32 0.5, %v3031_v20  ;;  %v1375_v31 = vmax.f32 %v1351_v47, 0.0 }
 0x129   :  { %v1399_v46 = vmul.f32 0.5, %v1375_v31 }
 0x12c   :  { %v1107_v53 = vpop.f32.mrf.mxu2 }
 0x12d   :  { %v1131_v2 = vpop.f32.mrf.mxu3  ;;  %v3313_v4 = vpop.f32.mrf.mxu1  ;;  %v1108_v23 = vadd.f32 %v1107_v53, %v1084_v26  ;;  %v3379_v53 = vadd.f32 %v1410_v32, %v1386_v34  ;;  %v1411_v26 = vmul.f32 0.5, %v3030_v50  ;;  %v1343_v32 = vadd.f32 %v1323_v19, %v3297_v37 }
 0x12e   :  { %v3311_v54 = vpop.f32.mrf.mxu0  ;;  %v1306_v34 = vadd.f32 %v1298_v52, %v1290_v15  ;;  %v1105_v37 = vadd.f32 %v3307_v61, %v1081_v35  ;;  %v3033_v52 = vld [vmem:[%s4245_s0 + $0x68] sm:$0xff]  ;;  %v1242_v15 = vadd.f32 %v1234_v29, %v3299_v42  ;;  %v1266_v61 = vadd.f32 %v3348_v33, %v3299_v42 }
 0x12f   :  { %v1132_v16 = vadd.f32 %v1131_v2, %v1108_v23  ;;  %v1335_v2 = vadd.f32 %v1323_v19, %v3295_v58  ;;  %v3402_v23 = vperm.slane %v3318_v57, 2  ;;  %v1387_v58 = vmul.f32 0.5, %v1363_v18 }
 0x130   :  { %v1086_v0 = vadd.f32 %v3313_v4, %v3311_v54  ;;  %v1367_v3 = vmax.f32 %v1343_v32, 0.0  ;;  %v1415_v10 = vmul.f32 0.5, %v3033_v52  ;;  %v3034_v54 = vld [vmem:[%s4245_s0 + $0x28] sm:$0xff]  ;;  %v3418_v50 = vadd.f32 %v1419_v24, %v1395_v38 }
 0x131   :  { %v1314_v40 = vadd.f32 %v1306_v34, %v1132_v16  ;;  %v1250_v19 = vmul.f32 0.3035, %v1132_v16  ;;  %v1274_v63 = vmul.f32 0.1263, %v1132_v16  ;;  %v1359_v60 = vmax.f32 %v1335_v2, 0.0 }
 0x132   :  { %v1407_v4 = vmul.f32 0.5, %v3034_v54  ;;  %v3420_v20 = vadd.f32 %v1411_v26, %v1387_v58  ;;  %v1129_v2 = vadd.f32 %v3309_v62, %v1105_v37  ;;  %v3423_v42 = vadd.f32 %v1403_v27, %v1379_v41  ;;  %v3035_v37 = vld [vmem:[%s4245_s0 + $0x90] sm:$0xff] }
 0x133   :  { %v1348_v51 = vadd.f32 %v3402_v23, %v1314_v40  ;;  %v1258_v32 = vadd.f32 %v1250_v19, %v1242_v15  ;;  %v1282_v31 = vadd.f32 %v1274_v63, %v1266_v61  ;;  %v3427_v33 = vadd.f32 %v1423_v30, %v1399_v46 }
 0x134   :  { %v3320_v5 = vpop.f32.mrf.mxu2  ;;  %v1391_v34 = vmul.f32 0.5, %v1367_v3  ;;  %v1383_v29 = vmul.f32 0.5, %v1359_v60  ;;  %v3434_v24 = vadd.f32 %v3366_v21, %v1390_v13  ;;  %v3437_v62 = vadd.f32 %v3371_v56, %v1382_v28 }
 0x135   :  { %v3323_v7 = vpop.f32.mrf.mxu3  ;;  %v3327_v9 = vpop.f32.mrf.mxu1  ;;  %v1110_v16 = vadd.f32 %v3320_v5, %v1086_v0  ;;  %v1372_v27 = vmax.f32 %v1348_v51, 0.0  ;;  %v1302_v35 = vmul.f32 0.0436, %v1129_v2  ;;  %v3449_v21 = vadd.f32 %v3423_v42, %v3381_v12 }
 0x136   :  { %v3325_v8 = vpop.f32.mrf.mxu0  ;;  %v3456_v38 = vadd.f32 %v1415_v10, %v1391_v34  ;;  %v3458_v39 = vadd.f32 %v1407_v4, %v1383_v29  ;;  %v1294_v30 = vmul.f32 0.2595, %v3301_v49  ;;  %v1420_v19 = vmul.f32 0.5, %v3035_v37  ;;  %v3037_v4 = vld [vmem:[%s4245_s0 + $0x10] sm:$0xff] }
 0x137   :  { %v1170_v5 = vadd.f32 %v3327_v9, %v3325_v8  ;;  %v1470_v8 = vadd.f32 %v3418_v50, %v3377_v1  ;;  %v3443_v9 = vadd.f32 %v3420_v20, %v3379_v53  ;;  %v1238_v0 = vmul.f32 0.4038, %v1129_v2 }
 0x138   :  { %v1396_v3 = vmul.f32 0.5, %v1372_v27  ;;  %v1310_v46 = vadd.f32 %v1302_v35, %v1294_v30  ;;  %v3496_v37 = vperm.slane %v3318_v57, 3 }
 0x139   :  { %v1246_v29 = vadd.f32 %v1238_v0, %v3301_v49 }
 0x13c   :  { %v3332_v14 = vpop.f32.mrf.mxu2 }
 0x13d   :  { %v3334_v17 = vpop.f32.mrf.mxu3  ;;  %v3341_v25 = vpop.f32.mrf.mxu1  ;;  %v1194_v56 = vadd.f32 %v3332_v14, %v1170_v5  ;;  %v3036_v14 = vld [vmem:[%s4245_s0 + $0x50] sm:$0xff]  ;;  %v3474_v5 = vadd.f32 %v1420_v19, %v1396_v3 }
 0x13e   :  { %v3336_v44 = vpop.f32.mrf.mxu0  ;;  %v1412_v63 = vmul.f32 0.5, %v3036_v14 }
 0x13f   :  { %v1471_v19 = vadd.f32 %v1470_v8, %v3474_v5 }
 0x144   :  { %v3356_v43 = vpop.f32.mrf.mxu2 }
 0x145   :  { %v3375_v55 = vpop.f32.mrf.mxu3  ;;  %v1174_v11 = vpop.f32.mrf.mxu1 }
 0x146   :  { %v1150_v48 = vpop.f32.mrf.mxu0 }
 0x147   :  { %v1175_v36 = vadd.f32 %v1174_v11, %v1150_v48  ;;  %v1134_v48 = vadd.f32 %v3323_v7, %v1110_v16  ;;  %v3431_v11 = vadd.f32 %v3361_v45, %v1398_v6  ;;  %v1340_v45 = vadd.f32 %v3402_v23, %v1282_v31 }
 0x148   :  { %v1332_v6 = vadd.f32 %v3402_v23, %v1258_v32  ;;  %v1218_v16 = vadd.f32 %v3334_v17, %v1194_v56 }
 0x149   :  { %v3454_v28 = vadd.f32 %v3427_v33, %v3431_v11  ;;  %v1278_v40 = vmul.f32 0.1263, %v1134_v48  ;;  %v1364_v10 = vmax.f32 %v1340_v45, 0.0  ;;  %v1254_v61 = vmul.f32 0.3035, %v1134_v48 }
 0x14a   :  { %v1356_v15 = vmax.f32 %v1332_v6, 0.0  ;;  %v1318_v32 = vadd.f32 %v1310_v46, %v1134_v48  ;;  %v1291_v27 = vmul.f32 0.2595, %v1218_v16  ;;  %v3040_v6 = vld [vmem:[%s4245_s0 + $0x30] sm:$0xff] }
 0x14b   :  { %v1388_v48 = vmul.f32 0.5, %v1364_v10  ;;  %v3491_v56 = vmul.f32 0.5, %v3040_v6  ;;  %v1262_v30 = vadd.f32 %v1254_v61, %v1246_v29 }
 0x14c   :  { %v1198_v59 = vpop.f32.mrf.mxu2 }
 0x14d   :  { %v1222_v22 = vpop.f32.mrf.mxu3  ;;  %v1176_v18 = vpop.f32.mrf.mxu1  ;;  %v1199_v26 = vadd.f32 %v1198_v59, %v1175_v36  ;;  %v1270_v59 = vadd.f32 %v1129_v2, %v3301_v49  ;;  %v1404_v36 = vmul.f32 0.5, %v3037_v4  ;;  %v1172_v2 = vadd.f32 %v3341_v25, %v3336_v44 }
 0x14e   :  { %v1152_v47 = vpop.f32.mrf.mxu0  ;;  %v3500_v46 = vadd.f32 %v1412_v63, %v1388_v48  ;;  %v1336_v57 = vadd.f32 %v3402_v23, %v1262_v30 }
 0x14f   :  { %v1223_v60 = vadd.f32 %v1222_v22, %v1199_v26  ;;  %v1177_v52 = vadd.f32 %v1176_v18, %v1152_v47  ;;  %v1286_v51 = vadd.f32 %v1278_v40, %v1270_v59  ;;  %v3038_v47 = vld [vmem:[%s4245_s0 + $0xb0] sm:$0xff]  ;;  %v1196_v44 = vadd.f32 %v3356_v43, %v1172_v2 }
 0x150   :  { %v3479_v17 = vmul.f32 0.5, %v3038_v47  ;;  %v3039_v18 = vld [vmem:[%s4245_s0 + $0x70] sm:$0xff]  ;;  %v1380_v26 = vmul.f32 0.5, %v1356_v15  ;;  %v1352_v40 = vadd.f32 %v3402_v23, %v1318_v32 }
 0x151   :  { %v1299_v31 = vmul.f32 0.0436, %v1223_v60  ;;  %v3484_v34 = vmul.f32 0.5, %v3039_v18  ;;  %v1235_v35 = vmul.f32 0.4038, %v1223_v60  ;;  %v1344_v49 = vadd.f32 %v3402_v23, %v1286_v51 }
 0x152   :  { %v1220_v14 = vadd.f32 %v3375_v55, %v1196_v44  ;;  %v1267_v0 = vadd.f32 %v1223_v60, %v1218_v16 }
 0x153   :  { %v1243_v10 = vadd.f32 %v1235_v35, %v1218_v16  ;;  %v1368_v51 = vmax.f32 %v1344_v49, 0.0  ;;  %v3041_v16 = vld [vmem:[%s4245_s0 + $0x98] sm:$0xff] }
 0x154   :  { %v1200_v7 = vpop.f32.mrf.mxu2  ;;  %v1295_v2 = vmul.f32 0.2595, %v1220_v14 }
 0x155   :  { %v1224_v13 = vpop.f32.mrf.mxu3  ;;  %v1179_v41 = vpop.f32.mrf.mxu1  ;;  %v1201_v22 = vadd.f32 %v1200_v7, %v1177_v52  ;;  %v3502_v52 = vadd.f32 %v1404_v36, %v1380_v26  ;;  %v1421_v36 = vmul.f32 0.5, %v3041_v16  ;;  %v1392_v26 = vmul.f32 0.5, %v1368_v51 }
 0x156   :  { %v1155_v58 = vpop.f32.mrf.mxu0 }
 0x157   :  { %v1180_v54 = vadd.f32 %v1179_v41, %v1155_v58  ;;  %v1225_v58 = vadd.f32 %v1224_v13, %v1201_v22  ;;  %v1307_v41 = vadd.f32 %v1299_v31, %v1291_v27  ;;  %v1461_v31 = vadd.f32 %v3443_v9, %v3500_v46  ;;  %v3042_v9 = vld [vmem:[%s4245_s0 + $0x58] sm:$0xff] }
 0x158   :  { %v1360_v27 = vmax.f32 %v1336_v57, 0.0  ;;  %v1413_v49 = vmul.f32 0.5, %v3042_v9 }
 0x159   :  { %v1303_v4 = vmul.f32 0.0436, %v1225_v58  ;;  %v1239_v22 = vmul.f32 0.4038, %v1225_v58 }
 0x15b   :  { %v1247_v30 = vadd.f32 %v1239_v22, %v1220_v14 }
 0x15c   :  { %v1203_v25 = vpop.f32.mrf.mxu2 }
 0x15d   :  { %v1204_v7 = vadd.f32 %v1203_v25, %v1180_v54  ;;  %v1227_v45 = vpop.f32.mrf.mxu3  ;;  %v1181_v3 = vpop.f32.mrf.mxu1  ;;  %v1376_v54 = vmax.f32 %v1352_v40, 0.0  ;;  %v1311_v25 = vadd.f32 %v1303_v4, %v1295_v2  ;;  %v1271_v40 = vadd.f32 %v1225_v58, %v1220_v14 }
 0x15e   :  { %v1157_v59 = vpop.f32.mrf.mxu0  ;;  %v1451_v58 = vadd.f32 %v3449_v21, %v3502_v52  ;;  %v1384_v14 = vmul.f32 0.5, %v1360_v27  ;;  %v3044_v21 = vld [vmem:[%s4245_s0 + $0xb8] sm:$0xff] }
 0x15f   :  { %v1228_v43 = vadd.f32 %v1227_v45, %v1204_v7  ;;  %v1182_v32 = vadd.f32 %v1181_v3, %v1157_v59  ;;  %v1400_v48 = vmul.f32 0.5, %v1376_v54  ;;  %v1425_v2 = vmul.f32 0.5, %v3044_v21 }
 0x161   :  { %v1251_v13 = vmul.f32 0.3035, %v1228_v43  ;;  %v1275_v15 = vmul.f32 0.1263, %v1228_v43  ;;  %v1315_v61 = vadd.f32 %v1307_v41, %v1228_v43  ;;  %v3043_v43 = vld [vmem:[%s4245_s0 + $0x18] sm:$0xff] }
 0x162   :  { %v1405_v41 = vmul.f32 0.5, %v3043_v43 }
 0x163   :  { %v1349_v8 = vadd.f32 %v3496_v37, %v1315_v61  ;;  %v1283_v55 = vadd.f32 %v1275_v15, %v1267_v0  ;;  %v1259_v60 = vadd.f32 %v1251_v13, %v1243_v10 }
 0x164   :  { %v1205_v63 = vpop.f32.mrf.mxu2 }
 0x165   :  { %v1206_v47 = vadd.f32 %v1205_v63, %v1182_v32  ;;  %v1373_v18 = vmax.f32 %v1349_v8, 0.0  ;;  %v1341_v23 = vadd.f32 %v3496_v37, %v1283_v55  ;;  %v1333_v29 = vadd.f32 %v3496_v37, %v1259_v60  ;;  %v1229_v44 = vpop.f32.mrf.mxu3 }
 0x166   :  { %v3530_v8 = vadd.f32 %v3479_v17, %v1400_v48  ;;  %v3533_v55 = vadd.f32 %v3484_v34, %v1392_v26  ;;  %v3045_v17 = vld [vmem:[%s4245_s0 + $0x78] sm:$0xff] }
 0x167   :  { %v1230_v35 = vadd.f32 %v1229_v44, %v1206_v47  ;;  %v1397_v7 = vmul.f32 0.5, %v1373_v18  ;;  %v1365_v45 = vmax.f32 %v1341_v23, 0.0  ;;  %v1357_v6 = vmax.f32 %v1333_v29, 0.0  ;;  %v3046_v29 = vld [vmem:[%s4245_s0 + $0x38] sm:$0xff] }
 0x168   :  { %v1417_v34 = vmul.f32 0.5, %v3045_v17  ;;  %v1455_v44 = vadd.f32 %v3458_v39, %v3437_v62 }
 0x169   :  { %v1255_v0 = vmul.f32 0.3035, %v1230_v35  ;;  %v1279_v59 = vmul.f32 0.1263, %v1230_v35  ;;  %v1319_v3 = vadd.f32 %v1311_v25, %v1230_v35  ;;  %v3519_v10 = vadd.f32 %v1421_v36, %v1397_v7 }
 0x16a   :  { %v1389_v13 = vmul.f32 0.5, %v1365_v45  ;;  %v1381_v15 = vmul.f32 0.5, %v1357_v6  ;;  %v3546_v36 = vadd.f32 %v3491_v56, %v1384_v14  ;;  %v1476_v56 = vadd.f32 %v3454_v28, %v3530_v8 }
 0x16b   :  { %v1263_v61 = vadd.f32 %v1255_v0, %v1247_v30  ;;  %v1287_v54 = vadd.f32 %v1279_v59, %v1271_v40  ;;  %v1472_v4 = vadd.f32 %v1471_v19, %v3519_v10  ;;  %v1353_v51 = vadd.f32 %v3496_v37, %v1319_v3 }
 0x16c   :  { %v3525_v57 = vadd.f32 %v1413_v49, %v1389_v13  ;;  %v3527_v32 = vadd.f32 %v1405_v41, %v1381_v15  ;;  %v1456_v6 = vadd.f32 %v1455_v44, %v3546_v36  ;;  %v3077_v28 = vmov 512.0  }
 0x16d   :  { %1473 = vadd.xlane.f32.xlu2 %v1472_v4  ;;  %v1377_v60 = vmax.f32 %v1353_v51, 0.0  ;;  %v1345_v19 = vadd.f32 %v3496_v37, %v1287_v54  ;;  %v1337_v22 = vadd.f32 %v3496_v37, %v1263_v61  ;;  %v1409_v37 = vmul.f32 0.5, %v3046_v29 }
 0x16e   :  { %v1462_v63 = vadd.f32 %v1461_v31, %v3525_v57  ;;  %v1452_v16 = vadd.f32 %v1451_v58, %v3527_v32  ;;  %v1465_v31 = vadd.f32 %v3456_v38, %v3434_v24  ;;  %3008 = vrcp.f32 %v3077_v28 }
 0x16f   :  { %v1401_v47 = vmul.f32 0.5, %v1377_v60  ;;  %v1369_v18 = vmax.f32 %v1345_v19, 0.0  ;;  %v1361_v23 = vmax.f32 %v1337_v22, 0.0  ;;  %v4254_v59 = vlaneseq }
 0x170   :  { %1463 = vadd.xlane.f32.xlu1 %v1462_v63  ;;  %1453 = vadd.xlane.f32.xlu0 %v1452_v16  ;;  %v1466_v27 = vadd.f32 %v1465_v31, %v3533_v55 }
 0x171   :  { %v3555_v25 = vadd.f32 %v1425_v2, %v1401_v47  ;;  %v1393_v48 = vmul.f32 0.5, %v1369_v18  ;;  %v1385_v26 = vmul.f32 0.5, %v1361_v23  ;;  %v3569_v3 = vshrl.u32 %v4254_v59, 7 }
 0x173   :  { %v1477_v35 = vadd.f32 %v1476_v56, %v3555_v25  ;;  %v3561_v7 = vadd.f32 %v1417_v34, %v1393_v48  ;;  %v3563_v45 = vadd.f32 %v1409_v37, %v1385_v26  ;;  %4263 = vst [vmem:[#allocation5_spill] sm:$0xff] %v3569_v3  ;;  %3000 = vset.pattern.permute.xlu2 %v3569_v3 }
 0x174   :  { %v3009_v9 = vpop.eup %3008  ;;  %2999 = vset.pattern.permute.xlu1 %v3569_v3  ;;  %2998 = vset.pattern.permute.xlu0 %v3569_v3 }
 0x175   :  { %1478 = vadd.xlane.f32.xlu2 %v1477_v35  ;;  %v1467_v30 = vadd.f32 %v1466_v27, %v3561_v7  ;;  %v1457_v40 = vadd.f32 %v1456_v6, %v3563_v45  ;;  %v1481_v49 = vmul.f32 512.0, %v3009_v9  ;;  %vm1485_vm0 = vweird.f32 %v3009_v9 }
 0x177   :  { %v1482_v43 = vsub.f32 1.0, %v1481_v49 }
 0x178   :  { %1468 = vadd.xlane.f32.xlu1 %v1467_v30  ;;  %1458 = vadd.xlane.f32.xlu0 %v1457_v40 }
 0x179   :  { %v1483_v41 = vmul.f32 %v3009_v9, %v1482_v43 }
 0x17b   :  { %v1484_v0 = vadd.f32 %v3009_v9, %v1483_v41 }
 0x17d   :  { %v3571_v13 = vsel %vm1485_vm0, %v3009_v9, %v1484_v0  ;;  %vm1674_vm0 = vcmask 1040384  }
 0x17e   :  { %4264 = vst [vmem:[#allocation6_spill] sm:$0xff] %v3571_v13 }
 0x1e0   :  { %v1474_v15 = vpop.xlane.xlu2 %1473 }
 0x1e1   :  { %v1491_v58 = vmul.f32 %v3571_v13, %v1474_v15 }
 0x1e3   :  { %v3578_v14 = vsub.f32 %v3377_v1, %v1491_v58  ;;  %v3581_v61 = vsub.f32 %v3418_v50, %v1491_v58  ;;  %v1464_v54 = vpop.xlane.xlu1 %1463  ;;  %v1454_v4 = vpop.xlane.xlu0 %1453  ;;  %v3584_v51 = vsub.f32 %v3474_v5, %v1491_v58  ;;  %v3589_v2 = vsub.f32 %v3519_v10, %v1491_v58 }
 0x1e4   :  { %v1489_v60 = vmul.f32 %v3571_v13, %v1464_v54  ;;  %v1487_v21 = vmul.f32 %v3571_v13, %v1454_v4 }
 0x1e5   :  { %v1533_v19 = vmul.f32 %v3578_v14, %v3578_v14  ;;  %v1534_v1 = vmul.f32 %v3581_v61, %v3581_v61  ;;  %v1535_v10 = vmul.f32 %v3584_v51, %v3584_v51  ;;  %v1536_v18 = vmul.f32 %v3589_v2, %v3589_v2 }
 0x1e6   :  { %v3596_v50 = vsub.f32 %v3379_v53, %v1489_v60  ;;  %v3599_v22 = vsub.f32 %v3420_v20, %v1489_v60  ;;  %v3602_v5 = vsub.f32 %v3381_v12, %v1487_v21  ;;  %v3605_v63 = vsub.f32 %v3423_v42, %v1487_v21 }
 0x1e7   :  { %v1561_v16 = vadd.f32 %v1534_v1, %v1533_v19  ;;  %v3610_v17 = vsub.f32 %v3500_v46, %v1489_v60  ;;  %v3613_v34 = vsub.f32 %v3525_v57, %v1489_v60  ;;  %v3625_v23 = vsub.f32 %v3502_v52, %v1487_v21 }
 0x1e8   :  { %v1479_v53 = vpop.xlane.xlu2 %1478  ;;  %v1525_v20 = vmul.f32 %v3596_v50, %v3596_v50  ;;  %v1526_v12 = vmul.f32 %v3599_v22, %v3599_v22  ;;  %v1517_v42 = vmul.f32 %v3602_v5, %v3602_v5  ;;  %v3630_v37 = vsub.f32 %v3527_v32, %v1487_v21 }
 0x1e9   :  { %v1492_v47 = vmul.f32 %v3571_v13, %v1479_v53  ;;  %v1562_v46 = vadd.f32 %v1561_v16, %v1535_v10  ;;  %v1527_v57 = vmul.f32 %v3610_v17, %v3610_v17  ;;  %v1518_v31 = vmul.f32 %v3605_v63, %v3605_v63 }
 0x1ea   :  { %v1551_v29 = vadd.f32 %v1526_v12, %v1525_v20  ;;  %v1528_v27 = vmul.f32 %v3613_v34, %v3613_v34  ;;  %v1520_v41 = vmul.f32 %v3630_v37, %v3630_v37 }
 0x1eb   :  { %v3635_v44 = vsub.f32 %v3431_v11, %v1492_v47  ;;  %v3638_v56 = vsub.f32 %v3427_v33, %v1492_v47  ;;  %v1469_v48 = vpop.xlane.xlu1 %1468  ;;  %v1459_v26 = vpop.xlane.xlu0 %1458  ;;  %v1563_v52 = vadd.f32 %v1562_v46, %v1536_v18  ;;  %v1541_v30 = vadd.f32 %v1518_v31, %v1517_v42 }
 0x1ec   :  { %v1490_v35 = vmul.f32 %v3571_v13, %v1469_v48  ;;  %v1488_v32 = vmul.f32 %v3571_v13, %v1459_v26  ;;  %v1552_v6 = vadd.f32 %v1551_v29, %v1527_v57  ;;  %v1519_v11 = vmul.f32 %v3625_v23, %v3625_v23  ;;  %v1844_v57 = vld [vmem:[%s4250_s5 + $0x2] sm:$0x3]  ;;  %v1843_v29 = vld [vmem:[%s4250_s5] sm:$0x3] }
 0x1ed   :  { %1564 = vadd.xlane.f32.xlu1 %v1563_v52  ;;  %v3647_v40 = vsub.f32 %v3530_v8, %v1492_v47  ;;  %v1537_v33 = vmul.f32 %v3635_v44, %v3635_v44  ;;  %v1538_v28 = vmul.f32 %v3638_v56, %v3638_v56  ;;  %v3668_v54 = vsub.f32 %v3555_v25, %v1492_v47 }
 0x1ee   :  { %v3654_v9 = vsub.f32 %v3434_v24, %v1490_v35  ;;  %v3657_v49 = vsub.f32 %v3456_v38, %v1490_v35  ;;  %v3660_v43 = vsub.f32 %v3437_v62, %v1488_v32  ;;  %v3665_v8 = vsub.f32 %v3458_v39, %v1488_v32 }
 0x1ef   :  { %v1553_v0 = vadd.f32 %v1552_v6, %v1528_v27  ;;  %v1542_v15 = vadd.f32 %v1541_v30, %v1519_v11  ;;  %v1566_v58 = vadd.f32 %v1538_v28, %v1537_v33  ;;  %v3671_v24 = vsub.f32 %v3533_v55, %v1490_v35  ;;  %v1845_v27 = vld [vmem:[%s4250_s5 + $0x4] sm:$0x3]  ;;  %v2002_v6 = vld [vmem:[%s4251_s6] sm:$0x7]  ;;  %v1668_v33 = vld [vmem:[%s4248_s3 + $0x8] sm:$0x77] }
 0x1f0   :  { %v1529_v38 = vmul.f32 %v3654_v9, %v3654_v9  ;;  %v1530_v62 = vmul.f32 %v3657_v49, %v3657_v49  ;;  %v1539_v39 = vmul.f32 %v3647_v40, %v3647_v40  ;;  %v3680_v60 = vsub.f32 %v3561_v7, %v1490_v35  ;;  %v3717_v11 = vld [vmem:[%s4248_s3] sm:$0x77] }
 0x1f1   :  { %4265 = vst [vmem:[#allocation7_spill] sm:$0xff] %v3671_v24  ;;  %1554 = vadd.xlane.f32.xlu2 %v1553_v0  ;;  %v1543_v4 = vadd.f32 %v1542_v15, %v1520_v41  ;;  %v3683_v25 = vsub.f32 %v3546_v36, %v1488_v32  ;;  %v1531_v55 = vmul.f32 %v3671_v24, %v3671_v24  ;;  %v1849_v31 = vperm.slane %v1843_v29, 0 }
 0x1f2   :  { %4266 = vst [vmem:[#allocation8_spill] sm:$0xff] %v3680_v60  ;;  %v1556_v21 = vadd.f32 %v1530_v62, %v1529_v38  ;;  %v1521_v19 = vmul.f32 %v3660_v43, %v3660_v43  ;;  %v1567_v1 = vadd.f32 %v1566_v58, %v1539_v39  ;;  %v3690_v10 = vsub.f32 %v3563_v45, %v1488_v32  ;;  %v3733_v38 = vld [vmem:[%s4249_s4] sm:$0x77] }
 0x1f3   :  { %1544 = vadd.xlane.f32.xlu0 %v1543_v4  ;;  %v1522_v16 = vmul.f32 %v3665_v8, %v3665_v8  ;;  %v1540_v36 = vmul.f32 %v3668_v54, %v3668_v54  ;;  %v1532_v53 = vmul.f32 %v3680_v60, %v3680_v60  ;;  %v1523_v20 = vmul.f32 %v3683_v25, %v3683_v25 }
 0x1f4   :  { %v1557_v7 = vadd.f32 %v1556_v21, %v1531_v55  ;;  %v1524_v45 = vmul.f32 %v3690_v10, %v3690_v10  ;;  %v1863_v48 = vperm.slane %v1844_v57, 0  ;;  %v1856_v26 = vperm.slane %v1843_v29, 1  ;;  %v1742_v55 = vld [vmem:[%s4249_s4 + $0x8] sm:$0x77] }
 0x1f5   :  { %v1546_v12 = vadd.f32 %v1522_v16, %v1521_v19  ;;  %v1568_v42 = vadd.f32 %v1567_v1, %v1540_v36  ;;  %v1870_v52 = vperm.slane %v1844_v57, 1  ;;  %v1877_v35 = vperm.slane %v1845_v27, 0 }
 0x1f6   :  { %v1558_v47 = vadd.f32 %v1557_v7, %v1532_v53  ;;  %v1884_v32 = vperm.slane %v1845_v27, 1  ;;  %v2006_v30 = vperm.slane %v2002_v6, 0  ;;  %v3723_v28 = vrot.slane %v3717_v11, 3 }
 0x1f7   :  { %v1547_v18 = vadd.f32 %v1546_v12, %v1523_v20  ;;  %v3725_v41 = vrot.slane %v1668_v33, 6  ;;  %v3727_v0 = vrot.slane %v1668_v33, 1  ;;  %v3750_v7 = vrot.slane %v3733_v38, 3 }
 0x1f8   :  { %v1687_v4 = vsel %vm1676_vm1, %v3717_v11, %v3723_v28  ;;  %v3752_v36 = vrot.slane %v1742_v55, 6  ;;  %v3757_v12 = vrot.slane %v1742_v55, 1  ;;  %v1681_v29 = vsel %vm1680_vm4, %v3717_v11, %v3723_v28 }
 0x1f9   :  { %1569 = vadd.xlane.f32.xlu2 %v1568_v42  ;;  %v1548_v46 = vadd.f32 %v1547_v18, %v1524_v45  ;;  %v1689_v39 = vsel %vm1688_vm2, %v3725_v41, %v3727_v0  ;;  %v3078_v42 = vmov 8.0   ;;  %v1755_v18 = vsel %vm1676_vm1, %v3733_v38, %v3750_v7 }
 0x1fa   :  { %v1691_v16 = vsel %vm1690_vm3, %v1687_v4, %v1689_v39  ;;  %v1756_v57 = vsel %vm1688_vm2, %v3752_v36, %v3757_v12 }
 0x1fb   :  { %1559 = vadd.xlane.f32.xlu0 %v1558_v47  ;;  %1549 = vadd.xlane.f32.xlu1 %v1548_v46  ;;  %v3762_v45 = vrot.slane %v1691_v16, 2 }
 0x20f   :  { %1854 = vperm.xlu0 %2998, %v1849_v31   ;;  %v1683_v31 = vsel %vm1682_vm5, %v3725_v41, %v3727_v0 }
 0x210   :  { %v1685_v4 = vsel %vm1684_vm6, %v1681_v29, %v1683_v31 }
 0x211   :  { %1868 = vperm.xlu2 %3000, %v1863_v48  }
 0x214   :  { %1861 = vperm.xlu1 %2999, %v1856_v26  }
 0x219   :  { %1875 = vperm.xlu2 %3000, %v1870_v52  }
 0x21c   :  { %1882 = vperm.xlu1 %2999, %v1877_v35   ;;  %v4255_v35 = vperm.slane %v3762_v45, 0 }
 0x221   :  { %1889 = vperm.xlu2 %3000, %v1884_v32   ;;  %v4258_v32 = vperm.slane %v3762_v45, 1 }
 0x229   :  { %2013 = vperm.xlu2 %3000, %v2006_v30  }
 0x260   :  { %v1565_v15 = vpop.xlane.xlu1 %1564 }
 0x261   :  { %v1575_v58 = vmul.f32 %v1565_v15, %v3571_v13 }
 0x263   :  { %v3735_v62 = vadd.f32 1e-06, %v1575_v58  ;;  %v1757_v58 = vsel %vm1690_vm3, %v1755_v18, %v1756_v57  ;;  %v1752_v18 = vsel %vm1682_vm5, %v3752_v36, %v3757_v12 }
 0x264   :  { %v1555_v21 = vpop.xlane.xlu2 %1554  ;;  %v3806_v31 = vrot.slane %v1757_v58, 2 }
 0x265   :  { %3010 = vrsqrt.f32 %v3735_v62  ;;  %v1573_v19 = vmul.f32 %v1555_v21, %v3571_v13  ;;  %vm1629_vm8 = vweird.f32 %v3735_v62 }
 0x266   :  { %v1545_v1 = vpop.xlane.xlu0 %1544  ;;  %3012 = vrcp.f32 %v3078_v42 }
 0x267   :  { %v3754_v53 = vadd.f32 1e-06, %v1573_v19  ;;  %v1571_v20 = vmul.f32 %v1545_v1, %v3571_v13  ;;  %v1751_v1 = vsel %vm1680_vm4, %v3733_v38, %v3750_v7 }
 0x269   :  { %3014 = vrsqrt.f32 %v3754_v53  ;;  %v3760_v47 = vadd.f32 1e-06, %v1571_v20  ;;  %vm1609_vm10 = vweird.f32 %v3754_v53 }
 0x26b   :  { %v3011_v46 = vpop.eup %3010  ;;  %3016 = vrsqrt.f32 %v3760_v47  ;;  %vm1589_vm15 = vweird.f32 %v3760_v47 }
 0x26c   :  { %v1624_v48 = vmul.f32 %v3011_v46, %v3735_v62  ;;  %v1570_v26 = vpop.xlane.xlu2 %1569  ;;  %v3778_v52 = vpop.eup %3012  ;;  %vm1630_vm7 = vweird.f32 %v3011_v46 }
 0x26d   :  { %v1576_v27 = vmul.f32 %v1570_v26, %v3571_v13  ;;  %v2221_v42 = vmul.f32 8.0, %v3778_v52  ;;  %vm1631_vm9 = vmor %vm1629_vm8, %vm1630_vm7  ;;  %vm2225_vm12 = vweird.f32 %v3778_v52 }
 0x26e   :  { %v1625_v6 = vmul.f32 %v3011_v46, %v1624_v48  ;;  %v1550_v30 = vpop.xlane.xlu1 %1549  ;;  %v1560_v33 = vpop.xlane.xlu0 %1559 }
 0x26f   :  { %v3786_v39 = vpop.eup %3014  ;;  %v3788_v55 = vadd.f32 1e-06, %v1576_v27  ;;  %v1572_v21 = vmul.f32 %v1550_v30, %v3571_v13  ;;  %v1574_v19 = vmul.f32 %v1560_v33, %v3571_v13  ;;  %v1753_v33 = vsel %vm1684_vm6, %v1751_v1, %v1752_v18 }
 0x270   :  { %v1626_v16 = vmul.f32 0.5, %v1625_v6  ;;  %v1604_v20 = vmul.f32 %v3786_v39, %v3754_v53  ;;  %v3811_v6 = vrot.slane %v1685_v4, 1  ;;  %v2222_v58 = vsub.f32 1.0, %v2221_v42 }
 0x271   :  { %3018 = vrsqrt.f32 %v3788_v55  ;;  %v3802_v57 = vadd.f32 1e-06, %v1572_v21  ;;  %v3804_v29 = vadd.f32 1e-06, %v1574_v19  ;;  %v3808_v48 = vpop.eup %3016  ;;  %v3825_v18 = vrot.slane %v1753_v33, 1 }
 0x272   :  { %v1627_v26 = vsub.f32 1.5, %v1626_v16  ;;  %v1605_v27 = vmul.f32 %v3786_v39, %v1604_v20  ;;  %v1584_v16 = vmul.f32 %v3808_v48, %v3760_v47  ;;  %v2223_v62 = vmul.f32 %v3778_v52, %v2222_v58 }
 0x273   :  { %3020 = vrsqrt.f32 %v3802_v57  ;;  %v4267_v58 = vperm.slane %v3762_v45, 2  ;;  %vm1610_vm11 = vweird.f32 %v3786_v39  ;;  %v4271_v13 = vperm.slane %v3806_v31, 2 }
 0x274   :  { %v1628_v21 = vmul.f32 %v3011_v46, %v1627_v26  ;;  %v1606_v19 = vmul.f32 0.5, %v1605_v27  ;;  %3022 = vrsqrt.f32 %v3804_v29  ;;  %v1585_v33 = vmul.f32 %v3808_v48, %v1584_v16  ;;  %vm1611_vm13 = vmor %vm1609_vm10, %vm1610_vm11 }
 0x275   :  { %v2224_v3 = vadd.f32 %v3778_v52, %v2223_v62  ;;  %vm1590_vm14 = vweird.f32 %v3808_v48  ;;  %vm1639_vm2 = vweird.f32 %v3788_v55  ;;  %vm1599_vm3 = vweird.f32 %v3802_v57 }
 0x276   :  { %v1632_v59 = vsel %vm1631_vm9, %v3011_v46, %v1628_v21  ;;  %v1607_v20 = vsub.f32 1.5, %v1606_v19  ;;  %vm1619_vm8 = vweird.f32 %v3804_v29  ;;  %vm1678_vm9 = vcmask 1041408   ;;  %vm1591_vm10 = vmor %vm1589_vm15, %vm1590_vm14 }
 0x277   :  { %v3827_v26 = vpop.eup %3018  ;;  %v1659_v42 = vmul.f32 %v1632_v59, %v3578_v14  ;;  %v1660_v27 = vmul.f32 %v1632_v59, %v3581_v61  ;;  %v1661_v15 = vmul.f32 %v1632_v59, %v3584_v51  ;;  %v1662_v4 = vmul.f32 %v1632_v59, %v3589_v2 }
 0x278   :  { %v1634_v59 = vmul.f32 %v3827_v26, %v3788_v55  ;;  %v1608_v30 = vmul.f32 %v3786_v39, %v1607_v20  ;;  %v4270_v20 = vperm.slane %v3806_v31, 1  ;;  %vm1640_vm6 = vweird.f32 %v3827_v26 }
 0x279   :  { %v3836_v1 = vpop.eup %3020  ;;  %v1733_v14 = vmul.f32 %v4255_v35, %v1659_v42  ;;  %v1734_v19 = vmul.f32 %v4258_v32, %v1660_v27  ;;  %v1735_v21 = vmul.f32 %v4267_v58, %v1661_v15  ;;  %v4268_v42 = vperm.slane %v3762_v45, 3  ;;  %vm1641_vm11 = vmor %vm1639_vm2, %vm1640_vm6 }
 0x27a   :  { %v3843_v51 = vpop.eup %3022  ;;  %v1594_v2 = vmul.f32 %v3836_v1, %v3802_v57  ;;  %v1586_v32 = vmul.f32 0.5, %v1585_v33  ;;  %v4269_v15 = vperm.slane %v3806_v31, 0  ;;  %vm1600_vm7 = vweird.f32 %v3836_v1 }
 0x27b   :  { %v1614_v16 = vmul.f32 %v3843_v51, %v3804_v29  ;;  %v1736_v35 = vmul.f32 %v4268_v42, %v1662_v4  ;;  %v1635_v42 = vmul.f32 %v3827_v26, %v1634_v59  ;;  %v1800_v61 = vadd.f32 %v4270_v20, %v1734_v19 }
 0x27c   :  { %v1799_v58 = vadd.f32 %v4269_v15, %v1733_v14  ;;  %v1595_v46 = vmul.f32 %v3836_v1, %v1594_v2  ;;  %v1801_v62 = vadd.f32 %v4271_v13, %v1735_v21  ;;  %v4272_v14 = vperm.slane %v3806_v31, 3 }
 0x27d   :  { %v1615_v33 = vmul.f32 %v3843_v51, %v1614_v16  ;;  %v1612_v59 = vsel %vm1611_vm13, %v3786_v39, %v1608_v30  ;;  %v2178_v19 = vrot.slane %v1800_v61, 4  ;;  %v3882_v20 = vsel %vm2225_vm12, %v3778_v52, %v2224_v3  ;;  %vm1601_vm12 = vmor %vm1599_vm3, %vm1600_vm7 }
 0x27e   :  { %v1802_v15 = vadd.f32 %v4272_v14, %v1736_v35  ;;  %v2172_v4 = vrot.slane %v1799_v58, 4  ;;  %v1827_v2 = vadd.f32 %v1800_v61, %v1799_v58  ;;  %v1587_v13 = vsub.f32 1.5, %v1586_v32 }
 0x27f   :  { %v2184_v21 = vrot.slane %v1801_v62, 4  ;;  %v3887_v16 = vsel %vm1676_vm1, %v3725_v41, %v3727_v0  ;;  %v1636_v35 = vmul.f32 0.5, %v1635_v42  ;;  %v1596_v14 = vmul.f32 0.5, %v1595_v46 }
 0x280   :  { %v2173_v53 = vadd.f32 %v2172_v4, %v1799_v58  ;;  %v1828_v27 = vadd.f32 %v1827_v2, %v1801_v62  ;;  %v2179_v39 = vadd.f32 %v2178_v19, %v1800_v61  ;;  %v1651_v30 = vmul.f32 %v1612_v59, %v3596_v50 }
 0x281   :  { %v1652_v60 = vmul.f32 %v1612_v59, %v3599_v22  ;;  %v1616_v3 = vmul.f32 0.5, %v1615_v33  ;;  %v2190_v52 = vrot.slane %v1802_v15, 4  ;;  %v2185_v4 = vadd.f32 %v2184_v21, %v1801_v62 }
 0x282   :  { %v1829_v32 = vadd.f32 %v1828_v27, %v1802_v15  ;;  %v2180_v58 = vrot.slane %v2179_v39, 2  ;;  %v1653_v41 = vmul.f32 %v1612_v59, %v3610_v17  ;;  %v1588_v0 = vmul.f32 %v3808_v48, %v1587_v13 }
 0x283   :  { %v2174_v50 = vrot.slane %v2173_v53, 2  ;;  %v1637_v46 = vsub.f32 1.5, %v1636_v35  ;;  %v1597_v22 = vsub.f32 1.5, %v1596_v14  ;;  %v2186_v42 = vrot.slane %v2185_v4, 2 }
 0x284   :  { %v2181_v61 = vadd.f32 %v2180_v58, %v2179_v39  ;;  %1830 = vadd.xlane.f32.xlu1 %v1829_v32  ;;  %v1617_v33 = vsub.f32 1.5, %v1616_v3  ;;  %v2191_v27 = vadd.f32 %v2190_v52, %v1802_v15  ;;  %v1654_v62 = vmul.f32 %v1612_v59, %v3613_v34 }
 0x285   :  { %v4273_v17 = vperm.slane %v3811_v6, 0  ;;  %v2187_v13 = vadd.f32 %v2186_v42, %v2185_v4  ;;  %v4274_v21 = vperm.slane %v3811_v6, 1  ;;  %v4275_v35 = vperm.slane %v3811_v6, 2 }
 0x286   :  { %v2182_v19 = vrot.slane %v2181_v61, 1  ;;  %v2175_v39 = vadd.f32 %v2174_v50, %v2173_v53  ;;  %v2192_v15 = vrot.slane %v2191_v27, 2  ;;  %v4276_v34 = vperm.slane %v3811_v6, 3 }
 0x287   :  { %v1725_v2 = vmul.f32 %v4273_v17, %v1651_v30  ;;  %v1726_v24 = vmul.f32 %v4274_v21, %v1652_v60  ;;  %v1727_v14 = vmul.f32 %v4275_v35, %v1653_v41  ;;  %v4277_v30 = vperm.slane %v3825_v18, 0 }
 0x288   :  { %v1728_v59 = vmul.f32 %v4276_v34, %v1654_v62  ;;  %v1592_v52 = vsel %vm1591_vm10, %v3808_v48, %v1588_v0  ;;  %v1638_v60 = vmul.f32 %v3827_v26, %v1637_v46  ;;  %v1598_v32 = vmul.f32 %v3836_v1, %v1597_v22 }
 0x289   :  { %v1791_v3 = vadd.f32 %v4277_v30, %v1725_v2  ;;  %v4278_v58 = vperm.slane %v3825_v18, 1  ;;  %v2183_v41 = vadd.f32 %v2182_v19, %v2181_v61  ;;  %v2188_v47 = vrot.slane %v2187_v13, 1 }
 0x28a   :  { %v2193_v42 = vadd.f32 %v2192_v15, %v2191_v27  ;;  %v4279_v53 = vperm.slane %v3825_v18, 2  ;;  %v4280_v48 = vperm.slane %v3825_v18, 3  ;;  %v1618_v22 = vmul.f32 %v3843_v51, %v1617_v33 }
 0x28b   :  { %v1792_v4 = vadd.f32 %v4278_v58, %v1726_v24  ;;  %v1675_v24 = vsel %vm1674_vm0, %v3717_v11, %v3723_v28  ;;  %vm1620_vm13 = vweird.f32 %v3843_v51  ;;  %v2176_v55 = vrot.slane %v2175_v39, 1 }
 0x28c   :  { %v1793_v50 = vadd.f32 %v4279_v53, %v1727_v14  ;;  %v1794_v0 = vadd.f32 %v4280_v48, %v1728_v59  ;;  %v2194_v61 = vrot.slane %v2193_v42, 1  ;;  %v1643_v27 = vmul.f32 %v1592_v52, %v3602_v5  ;;  %vm1621_vm14 = vmor %vm1619_vm8, %vm1620_vm13 }
 0x28d   :  { %v1817_v46 = vadd.f32 %v1792_v4, %v1791_v3  ;;  %v2130_v62 = vrot.slane %v1792_v4, 4  ;;  %v1642_v17 = vsel %vm1641_vm11, %v3827_v26, %v1638_v60  ;;  %v3938_v2 = vsel %vm1601_vm12, %v3836_v1, %v1598_v32 }
 0x28e   :  { %v2189_v11 = vadd.f32 %v2188_v47, %v2187_v13  ;;  %v2244_v28 = vmul.f32 %v3882_v20, %v2183_v41  ;;  %v2124_v21 = vrot.slane %v1791_v3, 4  ;;  %v2136_v57 = vrot.slane %v1793_v50, 4 }
 0x28f   :  { %v1818_v19 = vadd.f32 %v1817_v46, %v1793_v50  ;;  %v2195_v33 = vadd.f32 %v2194_v61, %v2193_v42  ;;  %v2131_v14 = vadd.f32 %v2130_v62, %v1792_v4  ;;  %v2142_v15 = vrot.slane %v1794_v0, 4 }
 0x290   :  { %v1644_v5 = vmul.f32 %v1592_v52, %v3605_v63  ;;  %v1663_v26 = vmul.f32 %v1642_v17, %v3635_v44  ;;  %v3946_v1 = vsel %vm1621_vm14, %v3843_v51, %v1618_v22  ;;  %v2177_v34 = vadd.f32 %v2176_v55, %v2175_v39 }
 0x291   :  { %v1819_v35 = vadd.f32 %v1818_v19, %v1794_v0  ;;  %v1664_v13 = vmul.f32 %v1642_v17, %v3638_v56  ;;  %v3951_v59 = vmul.f32 %v3938_v2, %v3660_v43  ;;  %v3955_v29 = vmul.f32 %v3938_v2, %v3665_v8 }
 0x292   :  { %v3959_v63 = vsel %vm1678_vm9, %v1675_v24, %v3887_v16  ;;  %v2245_v44 = vmul.f32 %v3882_v20, %v2189_v11  ;;  %v2287_v51 = vrot.slane %v2244_v28, 6  ;;  %vm2294_vm15 = vcmask 1045508  }
 0x293   :  { %1820 = vadd.xlane.f32.xlu2 %v1819_v35  ;;  %v3962_v39 = vadd.f32 %v2124_v21, %v1791_v3  ;;  %v2137_v56 = vadd.f32 %v2136_v57, %v1793_v50  ;;  %v3966_v43 = vmul.f32 %v3946_v1, %v3654_v9  ;;  %v2246_v30 = vmul.f32 %v3882_v20, %v2195_v33 }
 0x294   :  { %v2132_v8 = vrot.slane %v2131_v14, 2  ;;  %v2143_v60 = vadd.f32 %v2142_v15, %v1794_v0  ;;  %v3971_v32 = vmul.f32 %v3946_v1, %v3657_v49  ;;  %v2243_v16 = vmul.f32 %v3882_v20, %v2177_v34 }
 0x295   :  { %v1693_v58 = vperm.slane %v3959_v63, 0  ;;  %v1694_v3 = vperm.slane %v3959_v63, 1  ;;  %v1645_v4 = vmul.f32 %v1592_v52, %v3625_v23  ;;  %v1646_v41 = vmul.f32 %v1592_v52, %v3630_v37 }
 0x296   :  { %v1695_v9 = vperm.slane %v3959_v63, 2  ;;  %v1696_v47 = vperm.slane %v3959_v63, 3  ;;  %v2288_v42 = vrot.slane %v2245_v44, 4  ;;  %v3981_v53 = vsel %vm1678_vm9, %v2243_v16, %v2287_v51 }
 0x297   :  { %v2126_v49 = vrot.slane %v3962_v39, 2  ;;  %v2138_v50 = vrot.slane %v2137_v56, 2  ;;  %v2289_v48 = vrot.slane %v2246_v30, 2  ;;  %v3984_v0 = vadd.f32 %v2132_v8, %v2131_v14 }
 0x298   :  { %v2144_v46 = vrot.slane %v2143_v60, 2  ;;  %v1748_v23 = vsel %vm1674_vm0, %v3733_v38, %v3750_v7  ;;  %v1717_v37 = vmul.f32 %v1693_v58, %v1643_v27  ;;  %v1718_v52 = vmul.f32 %v1694_v3, %v1644_v5 }
 0x299   :  { %v1749_v62 = vsel %vm1676_vm1, %v3752_v36, %v3757_v12  ;;  %v1665_v24 = vmul.f32 %v1642_v17, %v3647_v40  ;;  %v1719_v22 = vmul.f32 %v1695_v9, %v1645_v4  ;;  %v1720_v55 = vmul.f32 %v1696_v47, %v1646_v41 }
 0x29a   :  { %v4002_v38 = vsel %vm1678_vm9, %v1748_v23, %v1749_v62  ;;  %v1666_v7 = vmul.f32 %v1642_v17, %v3668_v54  ;;  %v4005_v61 = vadd.f32 %v2138_v50, %v2137_v56  ;;  %v4281_v36 = vperm.slane %v3762_v45, 0 }
 0x29b   :  { %v1759_v27 = vperm.slane %v4002_v38, 0  ;;  %v1760_v19 = vperm.slane %v4002_v38, 1  ;;  %v4011_v12 = vadd.f32 %v2144_v46, %v2143_v60  ;;  %v1761_v11 = vperm.slane %v4002_v38, 2 }
 0x29c   :  { %v1737_v40 = vmul.f32 %v4281_v36, %v1663_v26  ;;  %v1762_v28 = vperm.slane %v4002_v38, 3  ;;  %v4282_v21 = vperm.slane %v3762_v45, 1  ;;  %v2134_v54 = vrot.slane %v3984_v0, 1 }
 0x29d   :  { %v1783_v17 = vadd.f32 %v1759_v27, %v1717_v37  ;;  %v1784_v33 = vadd.f32 %v1760_v19, %v1718_v52  ;;  %v4283_v35 = vperm.slane %v3762_v45, 2  ;;  %v4025_v15 = vsel %vm2294_vm15, %v2288_v42, %v2289_v48 }
 0x29e   :  { %v1738_v57 = vmul.f32 %v4282_v21, %v1664_v13  ;;  %v1785_v5 = vadd.f32 %v1761_v11, %v1719_v22  ;;  %v1786_v26 = vadd.f32 %v1762_v28, %v1720_v55  ;;  %v4284_v34 = vperm.slane %v3762_v45, 3 }
 0x29f   :  { %v1739_v14 = vmul.f32 %v4283_v35, %v1665_v24  ;;  %v1807_v44 = vadd.f32 %v1784_v33, %v1783_v17  ;;  %v2076_v51 = vrot.slane %v1783_v17, 4  ;;  %v2082_v56 = vrot.slane %v1784_v33, 4 }
 0x2a0   :  { %v1740_v13 = vmul.f32 %v4284_v34, %v1666_v7  ;;  %v4285_v30 = vperm.slane %v3806_v31, 0  ;;  %v2088_v60 = vrot.slane %v1785_v5, 4  ;;  %v2094_v16 = vrot.slane %v1786_v26, 4 }
 0x2a1   :  { %v4286_v4 = vperm.slane %v3806_v31, 1  ;;  %v4287_v42 = vperm.slane %v3806_v31, 2  ;;  %v1808_v48 = vadd.f32 %v1807_v44, %v1785_v5  ;;  %v2077_v46 = vadd.f32 %v2076_v51, %v1783_v17 }
 0x2a2   :  { %v1803_v8 = vadd.f32 %v4285_v30, %v1737_v40  ;;  %v2083_v23 = vadd.f32 %v2082_v56, %v1784_v33  ;;  %v4288_v45 = vperm.slane %v3806_v31, 3  ;;  %vm2296_vm1 = vcmask 1043456  }
 0x2a3   :  { %v1804_v41 = vadd.f32 %v4286_v4, %v1738_v57  ;;  %v1805_v50 = vadd.f32 %v4287_v42, %v1739_v14  ;;  %v2089_v52 = vadd.f32 %v2088_v60, %v1785_v5  ;;  %v2095_v62 = vadd.f32 %v2094_v16, %v1786_v26 }
 0x2a4   :  { %v1806_v37 = vadd.f32 %v4288_v45, %v1740_v13  ;;  %v2196_v22 = vrot.slane %v1803_v8, 4  ;;  %v1809_v55 = vadd.f32 %v1808_v48, %v1786_v26  ;;  %v2078_v7 = vrot.slane %v2077_v46, 2 }
 0x2a5   :  { %v1832_v24 = vadd.f32 %v1804_v41, %v1803_v8  ;;  %v2084_v36 = vrot.slane %v2083_v23, 2  ;;  %v2202_v40 = vrot.slane %v1804_v41, 4  ;;  %v2090_v21 = vrot.slane %v2089_v52, 2 }
 0x2a6   :  { %v2096_v57 = vrot.slane %v2095_v62, 2  ;;  %v2197_v34 = vadd.f32 %v2196_v22, %v1803_v8  ;;  %v2079_v14 = vadd.f32 %v2078_v7, %v2077_v46  ;;  %1810 = vadd.xlane.f32.xlu0 %v1809_v55  ;;  %v2208_v33 = vrot.slane %v1805_v50, 4 }
 0x2a7   :  { %v1833_v35 = vadd.f32 %v1832_v24, %v1805_v50  ;;  %v2085_v44 = vadd.f32 %v2084_v36, %v2083_v23  ;;  %v2203_v17 = vadd.f32 %v2202_v40, %v1804_v41  ;;  %v2091_v31 = vadd.f32 %v2090_v21, %v2089_v52 }
 0x2a8   :  { %v2097_v13 = vadd.f32 %v2096_v57, %v2095_v62  ;;  %v2198_v5 = vrot.slane %v2197_v34, 2  ;;  %v2080_v56 = vrot.slane %v2079_v14, 1  ;;  %v2209_v26 = vadd.f32 %v2208_v33, %v1805_v50 }
 0x2a9   :  { %v1834_v51 = vadd.f32 %v1833_v35, %v1806_v37  ;;  %v2086_v30 = vrot.slane %v2085_v44, 1  ;;  %v2204_v60 = vrot.slane %v2203_v17, 2  ;;  %v2092_v16 = vrot.slane %v2091_v31, 1 }
 0x2aa   :  { %v2098_v4 = vrot.slane %v2097_v13, 1  ;;  %v2199_v42 = vadd.f32 %v2198_v5, %v2197_v34  ;;  %v2214_v48 = vrot.slane %v1806_v37, 4  ;;  %v2140_v8 = vrot.slane %v4005_v61, 1 }
 0x2ab   :  { %1835 = vadd.xlane.f32.xlu2 %v1834_v51  ;;  %v2087_v46 = vadd.f32 %v2086_v30, %v2085_v44  ;;  %v2205_v23 = vadd.f32 %v2204_v60, %v2203_v17  ;;  %v2210_v45 = vrot.slane %v2209_v26, 2  ;;  %v2081_v41 = vadd.f32 %v2080_v56, %v2079_v14 }
 0x2ac   :  { %v2093_v24 = vadd.f32 %v2092_v16, %v2091_v31  ;;  %v2200_v52 = vrot.slane %v2199_v42, 1  ;;  %v2215_v62 = vadd.f32 %v2214_v48, %v1806_v37  ;;  %v2099_v22 = vadd.f32 %v2098_v4, %v2097_v13 }
 0x2ad   :  { %v4043_v55 = vmul.f32 %v3882_v20, %v2087_v46  ;;  %v2206_v7 = vrot.slane %v2205_v23, 1  ;;  %v2211_v50 = vadd.f32 %v2210_v45, %v2209_v26  ;;  %v4048_v36 = vadd.f32 %v2126_v49, %v3962_v39 }
 0x2ae   :  { %v2146_v40 = vrot.slane %v4011_v12, 1  ;;  %v4052_v21 = vmul.f32 %v3882_v20, %v2093_v24  ;;  %v2216_v57 = vrot.slane %v2215_v62, 2  ;;  %v4057_v37 = vsel %vm2296_vm1, %v3981_v53, %v4025_v15 }
 0x2af   :  { %v2201_v35 = vadd.f32 %v2200_v52, %v2199_v42  ;;  %v2207_v34 = vadd.f32 %v2206_v7, %v2205_v23  ;;  %v2212_v14 = vrot.slane %v2211_v50, 1  ;;  %v4062_v44 = vadd.f32 %v2134_v54, %v3984_v0  ;;  %v4289_v42 = vld [vmem:[#allocation7_spill] sm:$0xff] }
 0x2b0   :  { %v4065_v39 = vadd.f32 %v2140_v8, %v4005_v61  ;;  %v4068_v49 = vmul.f32 %v3882_v20, %v2081_v41  ;;  %v2217_v17 = vadd.f32 %v2216_v57, %v2215_v62  ;;  %v4071_v33 = vmul.f32 %v3882_v20, %v2099_v22 }
 0x2b1   :  { %v2275_v53 = vrot.slane %v4043_v55, 6  ;;  %v2213_v15 = vadd.f32 %v2212_v14, %v2211_v50  ;;  %v2248_v31 = vmul.f32 %v3882_v20, %v2207_v34  ;;  %v2276_v13 = vrot.slane %v4052_v21, 4 }
 0x2b2   :  { %v2218_v51 = vrot.slane %v2217_v17, 1  ;;  %v1649_v0 = vmul.f32 %v3938_v2, %v3683_v25  ;;  %v1650_v61 = vmul.f32 %v3938_v2, %v3690_v10  ;;  %v2247_v54 = vmul.f32 %v3882_v20, %v2201_v35 }
 0x2b3   :  { %v2249_v5 = vmul.f32 %v3882_v20, %v2213_v15  ;;  %v2290_v56 = vrot.slane %v2248_v31, 6  ;;  %v1721_v30 = vmul.f32 %v1693_v58, %v3951_v59  ;;  %v1722_v26 = vmul.f32 %v1694_v3, %v3955_v29 }
 0x2b4   :  { %v2219_v60 = vadd.f32 %v2218_v51, %v2217_v17  ;;  %v1723_v25 = vmul.f32 %v1695_v9, %v1649_v0  ;;  %v1724_v10 = vmul.f32 %v1696_v47, %v1650_v61  ;;  %vm2319_vm0 = vcmask 1045509   ;;  %v4290_v47 = vld [vmem:[#allocation8_spill] sm:$0xff] }
 0x2b5   :  { %v2291_v2 = vrot.slane %v2249_v5, 4  ;;  %v2310_v16 = vsel %vm1678_vm9, %v2247_v54, %v2290_v56  ;;  %v1787_v4 = vadd.f32 %v1759_v27, %v1721_v30  ;;  %v1657_v59 = vmul.f32 %v3946_v1, %v4289_v42 }
 0x2b6   :  { %v2250_v58 = vmul.f32 %v3882_v20, %v2219_v60  ;;  %vm2321_vm2 = vcmask 1047559   ;;  %v1788_v29 = vadd.f32 %v1760_v19, %v1722_v26  ;;  %v1789_v63 = vadd.f32 %v1761_v11, %v1723_v25 }
 0x2b7   :  { %v1790_v3 = vadd.f32 %v1762_v28, %v1724_v10  ;;  %v2100_v9 = vrot.slane %v1787_v4, 4  ;;  %v1658_v48 = vmul.f32 %v3946_v1, %v4290_v47  ;;  %v4291_v27 = vperm.slane %v3811_v6, 0 }
 0x2b8   :  { %v4292_v46 = vperm.slane %v3811_v6, 1  ;;  %v2292_v45 = vrot.slane %v2250_v58, 2  ;;  %v1812_v19 = vadd.f32 %v1788_v29, %v1787_v4  ;;  %v2106_v41 = vrot.slane %v1788_v29, 4 }
 0x2b9   :  { %v1729_v8 = vmul.f32 %v4291_v27, %v3966_v43  ;;  %v2112_v24 = vrot.slane %v1789_v63, 4  ;;  %v2101_v11 = vadd.f32 %v2100_v9, %v1787_v4  ;;  %v2118_v52 = vrot.slane %v1790_v3, 4 }
 0x2ba   :  { %v1730_v23 = vmul.f32 %v4292_v46, %v3971_v32  ;;  %v4293_v38 = vperm.slane %v3811_v6, 2  ;;  %v4294_v62 = vperm.slane %v3811_v6, 3  ;;  %v2311_v22 = vsel %vm2294_vm15, %v2291_v2, %v2292_v45 }
 0x2bb   :  { %v1813_v7 = vadd.f32 %v1812_v19, %v1789_v63  ;;  %v2107_v43 = vadd.f32 %v2106_v41, %v1788_v29  ;;  %v2113_v50 = vadd.f32 %v2112_v24, %v1789_v63  ;;  %v2312_v57 = vsel %vm2296_vm1, %v2310_v16, %v2311_v22 }
 0x2bc   :  { %v1731_v28 = vmul.f32 %v4293_v38, %v1657_v59  ;;  %v1732_v1 = vmul.f32 %v4294_v62, %v1658_v48  ;;  %v2102_v32 = vrot.slane %v2101_v11, 2  ;;  %v2119_v35 = vadd.f32 %v2118_v52, %v1790_v3 }
 0x2bd   :  { %v4295_v34 = vperm.slane %v3825_v18, 0  ;;  %v2332_v17 = vrot.slane %v2312_v57, 7  ;;  %v1814_v15 = vadd.f32 %v1813_v7, %v1790_v3  ;;  %v2108_v31 = vrot.slane %v2107_v43, 2 }
 0x2be   :  { %v2114_v51 = vrot.slane %v2113_v50, 2  ;;  %v2103_v0 = vadd.f32 %v2102_v32, %v2101_v11  ;;  %v2120_v61 = vrot.slane %v2119_v35, 2  ;;  %v4296_v6 = vperm.slane %v3825_v18, 1 }
 0x2bf   :  { %v1795_v14 = vadd.f32 %v4295_v34, %v1729_v8  ;;  %v4297_v5 = vperm.slane %v3825_v18, 2  ;;  %v2333_v30 = vsel %vm1680_vm4, %v2332_v17, %v4057_v37  ;;  %v2109_v60 = vadd.f32 %v2108_v31, %v2107_v43  ;;  %1815 = vadd.xlane.f32.xlu1 %v1814_v15 }
 0x2c0   :  { %v1796_v54 = vadd.f32 %v4296_v6, %v1730_v23  ;;  %v2115_v26 = vadd.f32 %v2114_v51, %v2113_v50  ;;  %v4298_v25 = vperm.slane %v3825_v18, 3  ;;  %v2334_v2 = vsel %vm1682_vm5, %v2332_v17, %v2333_v30 }
 0x2c1   :  { %v1797_v56 = vadd.f32 %v4297_v5, %v1731_v28  ;;  %v2104_v16 = vrot.slane %v2103_v0, 1  ;;  %v2121_v4 = vadd.f32 %v2120_v61, %v2119_v35  ;;  %v2335_v59 = vsel %vm2319_vm0, %v2332_v17, %v2334_v2 }
 0x2c2   :  { %v1798_v10 = vadd.f32 %v4298_v25, %v1732_v1  ;;  %v1822_v42 = vadd.f32 %v1796_v54, %v1795_v14  ;;  %v2110_v58 = vrot.slane %v2109_v60, 1  ;;  %v2116_v29 = vrot.slane %v2115_v26, 1 }
 0x2c3   :  { %v2148_v63 = vrot.slane %v1795_v14, 4  ;;  %v2336_v3 = vsel %vm2321_vm2, %v2332_v17, %v2335_v59  ;;  %v2105_v9 = vadd.f32 %v2104_v16, %v2103_v0  ;;  %v2122_v37 = vrot.slane %v2121_v4, 1 }
 0x2c4   :  { %v1823_v47 = vadd.f32 %v1822_v42, %v1797_v56  ;;  %2342 = vst [vmem:[%s4253_s8 + $0x10] sm:$0xff] %v2336_v3  ;;  %v2111_v18 = vadd.f32 %v2110_v58, %v2109_v60  ;;  %v2117_v48 = vadd.f32 %v2116_v29, %v2115_v26  ;;  %v2154_v8 = vrot.slane %v1796_v54, 4 }
 0x2c5   :  { %v2149_v27 = vadd.f32 %v2148_v63, %v1795_v14  ;;  %v2277_v46 = vrot.slane %v4071_v33, 2  ;;  %v2123_v23 = vadd.f32 %v2122_v37, %v2121_v4  ;;  %v2160_v19 = vrot.slane %v1797_v56, 4 }
 0x2c6   :  { %v1824_v45 = vadd.f32 %v1823_v47, %v1798_v10  ;;  %v2232_v41 = vmul.f32 %v3882_v20, %v2111_v18  ;;  %v2233_v24 = vmul.f32 %v3882_v20, %v2117_v48  ;;  %v2155_v52 = vadd.f32 %v2154_v8, %v1796_v54 }
 0x2c7   :  { %v2150_v11 = vrot.slane %v2149_v27, 2  ;;  %v2231_v38 = vmul.f32 %v3882_v20, %v2105_v9  ;;  %v2234_v28 = vmul.f32 %v3882_v20, %v2123_v23  ;;  %v2161_v62 = vadd.f32 %v2160_v19, %v1797_v56 }
 0x2c8   :  { %v2166_v1 = vrot.slane %v1798_v10, 4  ;;  %1825 = vadd.xlane.f32.xlu0 %v1824_v45  ;;  %v2278_v22 = vrot.slane %v2232_v41, 6  ;;  %v2279_v7 = vrot.slane %v2233_v24, 4  ;;  %v2156_v33 = vrot.slane %v2155_v52, 2 }
 0x2c9   :  { %v2151_v43 = vadd.f32 %v2150_v11, %v2149_v27  ;;  %v2147_v50 = vadd.f32 %v2146_v40, %v4011_v12  ;;  %v2280_v57 = vrot.slane %v2234_v28, 2  ;;  %v2162_v32 = vrot.slane %v2161_v62, 2  ;;  %v1869_v11 = vpop.permute.xlu2 %1868 }
 0x2ca   :  { %v2167_v35 = vadd.f32 %v2166_v1, %v1798_v10  ;;  %v2293_v34 = vsel %vm1678_vm9, %v4068_v49, %v2275_v53  ;;  %v2295_v14 = vsel %vm2294_vm15, %v2276_v13, %v2277_v46  ;;  %v2298_v17 = vsel %vm1678_vm9, %v2231_v38, %v2278_v22  ;;  %v4299_v22 = vld [vmem:[#allocation6_spill] sm:$0xff] }
 0x2cb   :  { %v2157_v15 = vadd.f32 %v2156_v33, %v2155_v52  ;;  %v2299_v31 = vsel %vm2294_vm15, %v2279_v7, %v2280_v57  ;;  %v2152_v51 = vrot.slane %v2151_v43, 1  ;;  %v2163_v0 = vadd.f32 %v2162_v32, %v2161_v62  ;;  %v1862_v52 = vpop.permute.xlu1 %1861 }
 0x2cc   :  { %v2168_v12 = vrot.slane %v2167_v35, 2  ;;  %v2128_v40 = vrot.slane %v4048_v36, 1  ;;  %v2300_v61 = vsel %vm2296_vm1, %v2298_v17, %v2299_v31  ;;  %v2236_v49 = vmul.f32 %v3882_v20, %v4062_v44 }
 0x2cd   :  { %v2158_v55 = vrot.slane %v2157_v15, 1  ;;  %v2316_v53 = vrot.slane %v2300_v61, 7  ;;  %v2164_v21 = vrot.slane %v2163_v0, 1  ;;  %v2237_v13 = vmul.f32 %v3882_v20, %v4065_v39 }
 0x2ce   :  { %v2169_v6 = vadd.f32 %v2168_v12, %v2167_v35  ;;  %v2238_v54 = vmul.f32 %v3882_v20, %v2147_v50  ;;  %v2297_v5 = vsel %vm2296_vm1, %v2293_v34, %v2295_v14  ;;  %v2153_v60 = vadd.f32 %v2152_v51, %v2151_v43  ;;  %v1855_v14 = vpop.permute.xlu0 %1854 }
 0x2cf   :  { %v2159_v56 = vadd.f32 %v2158_v55, %v2157_v15  ;;  %v2317_v30 = vsel %vm1680_vm4, %v2316_v53, %v2297_v5  ;;  %v2165_v26 = vadd.f32 %v2164_v21, %v2163_v0  ;;  %v2129_v2 = vadd.f32 %v2128_v40, %v4048_v36 }
 0x2d0   :  { %v2170_v25 = vrot.slane %v2169_v6, 1  ;;  %v2318_v10 = vsel %vm1682_vm5, %v2316_v53, %v2317_v30  ;;  %v2281_v42 = vrot.slane %v2236_v49, 6  ;;  %v2282_v59 = vrot.slane %v2237_v13, 4  ;;  %v4300_v30 = vld [vmem:[#allocation5_spill] sm:$0xff] }
 0x2d1   :  { %v2240_v44 = vmul.f32 %v3882_v20, %v2159_v56  ;;  %v2320_v16 = vsel %vm2319_vm0, %v2316_v53, %v2318_v10  ;;  %v2241_v39 = vmul.f32 %v3882_v20, %v2165_v26  ;;  %v2283_v63 = vrot.slane %v2238_v54, 2  ;;  %v1876_v38 = vpop.permute.xlu2 %1875 }
 0x2d2   :  { %v2171_v4 = vadd.f32 %v2170_v25, %v2169_v6  ;;  %v2322_v58 = vsel %vm2321_vm2, %v2316_v53, %v2320_v16  ;;  %v2239_v3 = vmul.f32 %v3882_v20, %v2153_v60  ;;  %v2235_v37 = vmul.f32 %v3882_v20, %v2129_v2  ;;  %v3047_v60 = vld [vmem:[%s4251_s6] sm:$0x7] }
 0x2d3   :  { %v2284_v29 = vrot.slane %v2240_v44, 6  ;;  %2340 = vst [vmem:[%s4253_s8] sm:$0xff] %v2322_v58  ;;  %v2285_v36 = vrot.slane %v2241_v39, 4  ;;  %v2302_v27 = vsel %vm2294_vm15, %v2282_v59, %v2283_v63  ;;  %v1883_v28 = vpop.permute.xlu1 %1882  ;;  %v3079_v50 = vmov 0  }
 0x2d4   :  { %v2242_v9 = vmul.f32 %v3882_v20, %v2171_v4  ;;  %v2301_v48 = vsel %vm1678_vm9, %v2235_v37, %v2281_v42  ;;  %3002 = vset.pattern.permute.xlu0 %v3079_v50  ;;  %3001 = vset.pattern.permute.xlu1 %v3079_v50  ;;  %v2004_v26 = vrot.slane %v3047_v60, 1  ;;  %v2005_v25 = vrot.slane %v3047_v60, 2 }
 0x2d5   :  { %v2304_v18 = vsel %vm1678_vm9, %v2239_v3, %v2284_v29  ;;  %v2303_v45 = vsel %vm2296_vm1, %v2301_v48, %v2302_v27  ;;  %3003 = vset.pattern.permute.xlu2 %v3079_v50  ;;  %v4301_v4 = vlaneseq  ;;  %vm2072_vm3 = vcmask 9216  }
 0x2d6   :  { %v2286_v47 = vrot.slane %v2242_v9, 2  ;;  %v2007_v10 = vperm.slane %v2004_v26, 0  ;;  %v2008_v44 = vperm.slane %v2005_v25, 0 }
 0x2d7   :  { %v4199_v39 = vand.u32 127, %v4301_v4 }
 0x2d8   :  { %v2305_v8 = vsel %vm2294_vm15, %v2285_v36, %v2286_v47 }
 0x2d9   :  { %v2306_v46 = vsel %vm2296_vm1, %v2304_v18, %v2305_v8  ;;  %v1890_v62 = vpop.permute.xlu2 %1889 }
 0x2da   :  { %v2325_v23 = vrot.slane %v2306_v46, 7 }
 0x2dc   :  { %v2326_v19 = vsel %vm1680_vm4, %v2325_v23, %v2303_v45 }
 0x2dd   :  { %v2327_v41 = vsel %vm1682_vm5, %v2325_v23, %v2326_v19  ;;  %vm1983_vm5 = vcmask 58368  }
 0x2de   :  { %v2328_v20 = vsel %vm2319_vm0, %v2325_v23, %v2327_v41 }
 0x2df   :  { %v2329_v24 = vsel %vm2321_vm2, %v2325_v23, %v2328_v20 }
 0x2e0   :  { %2341 = vst [vmem:[%s4253_s8 + $0x8] sm:$0xff] %v2329_v24 }
 0x2e1   :  { %v4186_v57 = vpop.permute.xlu2 %2013 }
 0x2f7   :  { %v1831_v1 = vpop.xlane.xlu1 %1830 }
 0x2f8   :  { %v1841_v7 = vmul.f32 %v1831_v1, %v4299_v22 }
 0x2fa   :  { %v1905_v43 = vmul.f32 %v1883_v28, %v1841_v7  ;;  %v1906_v33 = vmul.f32 %v1890_v62, %v1841_v7 }
 0x2fc   :  { %1946 = vperm.xlu1 %3001, %v1905_v43   ;;  %1949 = vperm.xlu0 %3002, %v1906_v33  }
 0x306   :  { %v1821_v32 = vpop.xlane.xlu2 %1820 }
 0x307   :  { %v1839_v35 = vmul.f32 %v1821_v32, %v4299_v22 }
 0x309   :  { %v1901_v34 = vmul.f32 %v1869_v11, %v1839_v35  ;;  %v1902_v61 = vmul.f32 %v1876_v38, %v1839_v35 }
 0x30b   :  { %1934 = vperm.xlu2 %3003, %v1901_v34  }
 0x319   :  { %v1811_v17 = vpop.xlane.xlu0 %1810 }
 0x31a   :  { %v1837_v15 = vmul.f32 %v1811_v17, %v4299_v22 }
 0x31c   :  { %v1897_v31 = vmul.f32 %v1855_v14, %v1837_v15  ;;  %v1898_v51 = vmul.f32 %v1862_v52, %v1837_v15 }
 0x31e   :  { %v1836_v0 = vpop.xlane.xlu2 %1835  ;;  %1925 = vperm.xlu0 %3002, %v1898_v51   ;;  %1922 = vperm.xlu1 %3001, %v1897_v31  }
 0x31f   :  { %v1842_v12 = vmul.f32 %v1836_v0, %v4299_v22 }
 0x321   :  { %v1907_v40 = vmul.f32 %v1883_v28, %v1842_v12  ;;  %v1908_v55 = vmul.f32 %v1890_v62, %v1842_v12 }
 0x323   :  { %1952 = vperm.xlu2 %3003, %v1907_v40  }
 0x326   :  { %1937 = vperm.xlu1 %3001, %v1902_v61  }
 0x32e   :  { %1955 = vperm.xlu1 %3001, %v1908_v55  }
 0x332   :  { %v1816_v49 = vpop.xlane.xlu1 %1815 }
 0x333   :  { %v1838_v53 = vmul.f32 %v1816_v49, %v4299_v22 }
 0x335   :  { %v1899_v21 = vmul.f32 %v1855_v14, %v1838_v53  ;;  %v1900_v6 = vmul.f32 %v1862_v52, %v1838_v53 }
 0x337   :  { %1928 = vperm.xlu2 %3003, %v1899_v21   ;;  %1931 = vperm.xlu1 %3001, %v1900_v6  }
 0x33b   :  { %v1826_v13 = vpop.xlane.xlu0 %1825 }
 0x33c   :  { %v1840_v54 = vmul.f32 %v1826_v13, %v4299_v22 }
 0x33e   :  { %v1903_v5 = vmul.f32 %v1869_v11, %v1840_v54  ;;  %v1904_v56 = vmul.f32 %v1876_v38, %v1840_v54 }
 0x33f   :  { %3005 = vset.pattern.permute.xlu1 %v4300_v30 }
 0x340   :  { %1940 = vperm.xlu0 %3002, %v1903_v5   ;;  %1943 = vperm.xlu2 %3003, %v1904_v56  }
 0x347   :  { %2025 = vperm.xlu1 %3005, %v2008_v44  }
 0x348   :  { %3004 = vset.pattern.permute.xlu0 %v4300_v30 }
 0x34f   :  { %3006 = vset.pattern.permute.xlu1 %v3079_v50 }
 0x350   :  { %2019 = vperm.xlu0 %3004, %v2007_v10  }
 0x358   :  { %3007 = vset.pattern.permute.xlu0 %v3079_v50 }
 0x365   :  { %v1935_v63 = vpop.permute.xlu2 %1934 }
 0x366   :  { %v1963_v8 = vperm.slane %v1935_v63, %v4199_v39 }
 0x36e   :  { %v1947_v2 = vpop.permute.xlu1 %1946  ;;  %v1950_v16 = vpop.permute.xlu0 %1949 }
 0x36f   :  { %v1967_v42 = vperm.slane %v1947_v2, %v4199_v39  ;;  %v1968_v59 = vperm.slane %v1950_v16, %v4199_v39 }
 0x371   :  { %v1975_v58 = vsel %vm1680_vm4, %v1968_v59, %v1967_v42 }
 0x372   :  { %v1996_v29 = vsel %vm1983_vm5, %v1975_v58, 0.0 }
 0x37a   :  { %1997 = vadd.xlane.f32.xlu0 %v1996_v29 }
 0x37d   :  { %v1953_v48 = vpop.permute.xlu2 %1952 }
 0x37e   :  { %v1969_v41 = vperm.slane %v1953_v48, %v4199_v39 }
 0x390   :  { %v1923_v3 = vpop.permute.xlu1 %1922  ;;  %v1926_v9 = vpop.permute.xlu0 %1925 }
 0x391   :  { %v1959_v36 = vperm.slane %v1923_v3, %v4199_v39  ;;  %v1960_v37 = vperm.slane %v1926_v9, %v4199_v39  ;;  %v1929_v24 = vpop.permute.xlu2 %1928 }
 0x392   :  { %v1961_v28 = vperm.slane %v1929_v24, %v4199_v39 }
 0x393   :  { %v1971_v47 = vsel %vm1680_vm4, %v1960_v37, %v1959_v36 }
 0x394   :  { %v1984_v18 = vsel %vm1983_vm5, %v1971_v47, 0.0 }
 0x395   :  { %1985 = vadd.xlane.f32.xlu0 %v1984_v18 }
 0x398   :  { %v1938_v27 = vpop.permute.xlu1 %1937 }
 0x399   :  { %v1964_v46 = vperm.slane %v1938_v27, %v4199_v39 }
 0x39a   :  { %v1944_v22 = vpop.permute.xlu2 %1943 }
 0x39b   :  { %v1973_v23 = vsel %vm1680_vm4, %v1964_v46, %v1963_v8  ;;  %v1966_v33 = vperm.slane %v1944_v22, %v4199_v39 }
 0x39c   :  { %v1990_v45 = vsel %vm1983_vm5, %v1973_v23, 0.0 }
 0x39d   :  { %1991 = vadd.xlane.f32.xlu1 %v1990_v45 }
 0x3a0   :  { %v1956_v19 = vpop.permute.xlu1 %1955 }
 0x3a1   :  { %v1970_v20 = vperm.slane %v1956_v19, %v4199_v39 }
 0x3a3   :  { %v1976_v11 = vsel %vm1680_vm4, %v1970_v20, %v1969_v41 }
 0x3a4   :  { %v1999_v52 = vsel %vm1983_vm5, %v1976_v11, 0.0 }
 0x3a5   :  { %2000 = vadd.xlane.f32.xlu1 %v1999_v52 }
 0x3a9   :  { %v1932_v38 = vpop.permute.xlu1 %1931 }
 0x3aa   :  { %v1962_v62 = vperm.slane %v1932_v38, %v4199_v39 }
 0x3ac   :  { %v1972_v1 = vsel %vm1680_vm4, %v1962_v62, %v1961_v28 }
 0x3ad   :  { %v1987_v7 = vsel %vm1983_vm5, %v1972_v1, 0.0 }
 0x3ae   :  { %1988 = vadd.xlane.f32.xlu2 %v1987_v7 }
 0x3b2   :  { %v1941_v43 = vpop.permute.xlu0 %1940 }
 0x3b3   :  { %v1965_v50 = vperm.slane %v1941_v43, %v4199_v39 }
 0x3b5   :  { %v1974_v32 = vsel %vm1680_vm4, %v1966_v33, %v1965_v50 }
 0x3b6   :  { %v1993_v35 = vsel %vm1983_vm5, %v1974_v32, 0.0 }
 0x3b7   :  { %1994 = vadd.xlane.f32.xlu2 %v1993_v35 }
 0x3b9   :  { %v2026_v17 = vpop.permute.xlu1 %2025 }
 0x3c2   :  { %v2020_v34 = vpop.permute.xlu0 %2019 }
 0x3ed   :  { %v1998_v14 = vpop.xlane.xlu0 %1997 }
 0x3ee   :  { %v2034_v40 = vadd.f32 %v2026_v17, %v1998_v14 }
 0x408   :  { %v1986_v15 = vpop.xlane.xlu0 %1985 }
 0x409   :  { %v2030_v31 = vadd.f32 %v4186_v57, %v1986_v15 }
 0x40b   :  { %2043 = vperm.xlu2 %3003, %v2030_v31  }
 0x410   :  { %v1992_v51 = vpop.xlane.xlu1 %1991 }
 0x411   :  { %v2032_v0 = vadd.f32 %v2020_v34, %v1992_v51 }
 0x413   :  { %2049 = vperm.xlu2 %3003, %v2032_v0  }
 0x418   :  { %v2001_v12 = vpop.xlane.xlu1 %2000 }
 0x419   :  { %v2035_v61 = vadd.f32 %v2026_v17, %v2001_v12 }
 0x41b   :  { %2058 = vperm.xlu0 %3007, %v2035_v61   ;;  %2055 = vperm.xlu2 %3003, %v2034_v40  }
 0x421   :  { %v1989_v55 = vpop.xlane.xlu2 %1988 }
 0x422   :  { %v2031_v49 = vadd.f32 %v4186_v57, %v1989_v55 }
 0x424   :  { %2046 = vperm.xlu1 %3006, %v2031_v49  }
 0x42a   :  { %v1995_v53 = vpop.xlane.xlu2 %1994 }
 0x42b   :  { %v2033_v21 = vadd.f32 %v2020_v34, %v1995_v53 }
 0x42d   :  { %2052 = vperm.xlu1 %3006, %v2033_v21  }
 0x465   :  { %v2044_v6 = vpop.permute.xlu2 %2043 }
 0x466   :  { %v2060_v26 = vperm.slane %v2044_v6, %v4199_v39 }
 0x46d   :  { %v2050_v13 = vpop.permute.xlu2 %2049 }
 0x46e   :  { %v2062_v2 = vperm.slane %v2050_v13, %v4199_v39 }
 0x475   :  { %v2056_v54 = vpop.permute.xlu2 %2055 }
 0x476   :  { %v2064_v56 = vperm.slane %v2056_v54, %v4199_v39 }
 0x48d   :  { %v2059_v5 = vpop.permute.xlu0 %2058 }
 0x48e   :  { %v2065_v30 = vperm.slane %v2059_v5, %v4199_v39 }
 0x490   :  { %v2068_v60 = vsel %vm1680_vm4, %v2065_v30, %v2064_v56 }
 0x491   :  { %2075 = vst.msk [vmem:[%s4252_s7 + $0x4] sm:$0x3] %vm2072_vm3, %v2068_v60 }
 0x496   :  { %v2047_v57 = vpop.permute.xlu1 %2046 }
 0x497   :  { %v2061_v25 = vperm.slane %v2047_v57, %v4199_v39 }
 0x499   :  { %v2066_v10 = vsel %vm1680_vm4, %v2061_v25, %v2060_v26 }
 0x49a   :  { %2073 = vst.msk [vmem:[%s4252_s7] sm:$0x3] %vm2072_vm3, %v2066_v10 }
 0x49f   :  { %v2053_v44 = vpop.permute.xlu1 %2052 }
 0x4a0   :  { %v2063_v16 = vperm.slane %v2053_v44, %v4199_v39 }
 0x4a2   :  { %v2067_v4 = vsel %vm1680_vm4, %v2063_v16, %v2062_v2 }
 0x4a3   :  { %2074 = vst.msk [vmem:[%s4252_s7 + $0x2] sm:$0x3] %vm2072_vm3, %v2067_v4 }
 0x4a4   :  { %2351 = vsyncpa [#allocation3], 1 }

</bundles_post_ra>
